<compile_context>
chip_gen: v7x
topology: tpu7x:2x2x1
jax: 0.10.0
libtpu: 0.0.40
codegen_flags: <defaults>
</compile_context>

<pallas_src>
import jax
import jax.numpy as jnp
from jax import lax
from jax.experimental import pallas as pl
from jax.experimental.pallas import tpu as pltpu


def attention_decoder_kernel(emb_ref, h0_ref, hs_ref, hst_ref,
                             wi_ref, wh_ref, bi_ref, bh_ref,
                             wo_ref, bo_ref,
                             logits_ref, state_ref, attn_ref):
    B, H = h0_ref.shape                       # (B, H)
    T_dec = emb_ref.shape[0] // B             # emb is time-major flattened 2-D

    # Gate-stacked weights, lanes = [r | z | n].
    wi = wi_ref[...]                          # (E, 3H)
    wh = wh_ref[...]                          # (H, 3H)
    bi = bi_ref[...]                          # (1, 3H)
    bh = bh_ref[...]                          # (1, 3H)

    # All timesteps' input projections in a single MXU pass.
    gi = jnp.dot(emb_ref[...], wi, preferred_element_type=jnp.float32) + bi   # (T_dec*B, 3H)

    h = h0_ref[...]                           # (B, H)
    outs = []
    for t in range(T_dec):                    # fully unrolled: all slices static
        gh = jnp.dot(h, wh, preferred_element_type=jnp.float32) + bh          # (B, 3H)
        x = gi[t * B:(t + 1) * B, :]                                          # (B, 3H)
        r = jax.nn.sigmoid(x[:, 0:H] + gh[:, 0:H])
        z = jax.nn.sigmoid(x[:, H:2 * H] + gh[:, H:2 * H])
        n = jnp.tanh(x[:, 2 * H:3 * H] + r * gh[:, 2 * H:3 * H])
        h = (1.0 - z) * n + z * h
        outs.append(h)

    state_ref[...] = h                        # final hidden state (B, H)

    out_b = jnp.stack(outs, axis=1)           # (B, T_dec, H), kept in vregs
    hs_enc = hs_ref[...]                      # (B, T_enc, H)
    hs_enc_t = hst_ref[...]                   # (B, H, T_enc)  pre-transposed

    # Attention scores, lane-dense over T_enc; contraction is (last x 2nd-last)
    # so no in-kernel transpose is needed.  Softmax over the last axis.
    s = jnp.einsum('btd,bdj->btj', out_b, hs_enc_t,
                   preferred_element_type=jnp.float32)                        # (B, T_dec, T_enc)
    m = jnp.max(s, axis=-1, keepdims=True)
    e = jnp.exp(s - m)
    # exact reciprocal keeps the strict f32 reference tolerance (approx=True is
    # a free EUP win once outputs are bf16 / tolerances relaxed)
    attn = e * pl.reciprocal(jnp.sum(e, axis=-1, keepdims=True), approx=False)
    attn_ref[...] = attn                      # (B, T_dec, T_enc)

    # Context vectors c[b, t] = sum_j attn[b, t, j] * hs[b, j].
    c = jnp.einsum('btj,bjd->btd', attn, hs_enc,
                   preferred_element_type=jnp.float32)                        # (B, T_dec, H)

    # Fused output projection: concat([out, c], -1) @ W_out + b_out.
    cat = jnp.concatenate([out_b.reshape(B * T_dec, H),
                           c.reshape(B * T_dec, H)], axis=1)                  # (B*T_dec, 2H)
    logits_ref[...] = (jnp.dot(cat, wo_ref[...],
                               preferred_element_type=jnp.float32)
                       + bo_ref[...])                                         # (B*T_dec, V)


def attention_decoder(sequence, hs, h0, params):
    """sequence: (B, T_dec) int32; hs: (B, T_enc, H); h0: (1, B, H)."""
    # TODO(synk): embedding gather stays as jnp.take wrapper glue; an in-kernel
    # gather would need manual DMA machinery that is not warranted at this size.
    emb = jnp.take(params["embedding"], sequence, axis=0)   # (B, T_dec, E)
    B, T_dec, E = emb.shape
    _, T_enc, H = hs.shape
    V = params["wo"].shape[-1]

    # Time-major flattened rows [t*B + b] so per-step slices inside the kernel
    # are contiguous static row windows.
    emb_tm = jnp.transpose(emb, (1, 0, 2)).reshape(T_dec * B, E)
    h0_b = h0[0]                                            # (B, H)
    hs_t = jnp.transpose(hs, (0, 2, 1))                     # (B, H, T_enc)

    # Whole batch fits one grid step at these sizes; for large B, tile batch
    # along this grid axis (and mark it "parallel" to use both v7x TCs).
    kernel = pl.pallas_call(
        attention_decoder_kernel,
        out_shape=(
            jax.ShapeDtypeStruct((B * T_dec, V), jnp.float32),     # logits (flat)
            jax.ShapeDtypeStruct((B, H), jnp.float32),             # final state
            jax.ShapeDtypeStruct((B, T_dec, T_enc), jnp.float32),  # attn (lane-dense)
        ),
        grid=(1,),
        in_specs=[
            pl.BlockSpec((T_dec * B, E), lambda i: (0, 0)),        # emb (time-major)
            pl.BlockSpec((B, H), lambda i: (0, 0)),                # h0
            pl.BlockSpec((B, T_enc, H), lambda i: (0, 0, 0)),      # encoder states
            pl.BlockSpec((B, H, T_enc), lambda i: (0, 0, 0)),      # encoder states, transposed
            pl.BlockSpec((E, 3 * H), lambda i: (0, 0)),            # W_ih [r|z|n]
            pl.BlockSpec((H, 3 * H), lambda i: (0, 0)),            # W_hh [r|z|n]
            pl.BlockSpec((1, 3 * H), lambda i: (0, 0)),            # b_ih
            pl.BlockSpec((1, 3 * H), lambda i: (0, 0)),            # b_hh
            pl.BlockSpec((2 * H, V), lambda i: (0, 0)),            # W_out (fused)
            pl.BlockSpec((1, V), lambda i: (0, 0)),                # b_out
        ],
        out_specs=(
            pl.BlockSpec((B * T_dec, V), lambda i: (0, 0)),
            pl.BlockSpec((B, H), lambda i: (0, 0)),
            pl.BlockSpec((B, T_dec, T_enc), lambda i: (0, 0, 0)),
        ),
        compiler_params=pltpu.CompilerParams(
            dimension_semantics=("arbitrary",)),
    )
    logits_flat, state, attn_bt = kernel(
        emb_tm, h0_b, hs, hs_t,
        params["wi"], params["wh"], params["bi"], params["bh"],
        params["wo"], params["bo"])

    logits = logits_flat.reshape(B, T_dec, V)
    attn = jnp.transpose(attn_bt, (0, 2, 1))                # (B, T_enc, T_dec)
    return logits, state[None], attn                        # state -> (1, B, H)


def init_params(key, vocab_size, embedding_dim, hidden_dim):
    ks = jax.random.split(key, 7)
    emb = jax.random.normal(ks[0], (vocab_size, embedding_dim), jnp.float32)
    emb = emb.at[0].set(0.0)                       # padding_idx=0 row is zero
    k = 1.0 / (hidden_dim ** 0.5)
    # Gate-stacked layouts (lanes = [r | z | n]) as consumed by the kernel.
    wi = jax.random.uniform(ks[1], (embedding_dim, 3 * hidden_dim), jnp.float32, -k, k)
    wh = jax.random.uniform(ks[2], (hidden_dim, 3 * hidden_dim), jnp.float32, -k, k)
    bi = jax.random.uniform(ks[3], (1, 3 * hidden_dim), jnp.float32, -k, k)
    bh = jax.random.uniform(ks[4], (1, 3 * hidden_dim), jnp.float32, -k, k)
    kl = 1.0 / ((2 * hidden_dim) ** 0.5)
    wo = jax.random.uniform(ks[5], (2 * hidden_dim, vocab_size), jnp.float32, -kl, kl)
    bo = jax.random.uniform(ks[6], (1, vocab_size), jnp.float32, -kl, kl)
    return dict(embedding=emb, wi=wi, wh=wh, bi=bi, bh=bh, wo=wo, bo=bo)


def reference(sequence, hs, h0, p):
    """Pure-JAX re-statement of the PyTorch forward for verification."""
    emb = jnp.take(p["embedding"], sequence, axis=0)       # (B, T, E)
    H = hs.shape[-1]

    def gru_step(h, x):                                    # h (B,H), x (B,E)
        gi = x @ p["wi"] + p["bi"]
        gh = h @ p["wh"] + p["bh"]
        r = jax.nn.sigmoid(gi[:, 0:H] + gh[:, 0:H])
        z = jax.nn.sigmoid(gi[:, H:2 * H] + gh[:, H:2 * H])
        n = jnp.tanh(gi[:, 2 * H:] + r * gh[:, 2 * H:])
        h_new = (1.0 - z) * n + z * h
        return h_new, h_new

    h_last, outs = lax.scan(gru_step, h0[0], jnp.transpose(emb, (1, 0, 2)))
    output = jnp.transpose(outs, (1, 0, 2))                # (B, T, H)
    s = jnp.einsum('bjh,bth->bjt', hs, output)             # (B, T_enc, T_dec)
    attn = jax.nn.softmax(s, axis=1)
    c = jnp.einsum('bjt,bjh->bth', attn, hs)               # (B, T_dec, H)
    cat = jnp.concatenate([output, c], axis=-1)            # (B, T_dec, 2H)
    logits = jnp.einsum('btk,kv->btv', cat, p["wo"]) + p["bo"][0]
    return logits, h_last[None], attn


if __name__ == "__main__":
    vocab_size, embedding_dim, hidden_dim = 24, 16, 32
    B, T_dec, T_enc = 2, 8, 12

    key = jax.random.PRNGKey(0)
    kp, kseq, khs, kh0 = jax.random.split(key, 4)
    params = init_params(kp, vocab_size, embedding_dim, hidden_dim)

    sequence = jax.random.randint(kseq, (B, T_dec), 0, vocab_size, dtype=jnp.int32)
    hs = jax.random.normal(khs, (B, T_enc, hidden_dim), jnp.float32)
    h0 = jax.random.normal(kh0, (1, B, hidden_dim), jnp.float32)

    logits, state, attn = attention_decoder(sequence, hs, h0, params)
    jax.block_until_ready((logits, state, attn))

    ref_logits, ref_state, ref_attn = reference(sequence, hs, h0, params)
    assert logits.shape == (B, T_dec, vocab_size)
    assert state.shape == (1, B, hidden_dim)
    assert attn.shape == (B, T_enc, T_dec)
    assert jnp.allclose(logits, ref_logits, atol=2e-3, rtol=2e-3)
    assert jnp.allclose(state, ref_state, atol=2e-3, rtol=2e-3)
    assert jnp.allclose(attn, ref_attn, atol=2e-3, rtol=2e-3)

    print("KERNEL_OK")
</pallas_src>

<mosaic_0001>
module attributes {stable_mosaic.version = 11 : i64} {
  func.func @attention_decoder_kernel(%arg0: i32, %arg1: memref<16x16xf32, #tpu.memory_space<vmem>>, %arg2: memref<2x32xf32, #tpu.memory_space<vmem>>, %arg3: memref<2x12x32xf32, #tpu.memory_space<vmem>>, %arg4: memref<2x32x12xf32, #tpu.memory_space<vmem>>, %arg5: memref<16x96xf32, #tpu.memory_space<vmem>>, %arg6: memref<32x96xf32, #tpu.memory_space<vmem>>, %arg7: memref<1x96xf32, #tpu.memory_space<vmem>>, %arg8: memref<1x96xf32, #tpu.memory_space<vmem>>, %arg9: memref<64x24xf32, #tpu.memory_space<vmem>>, %arg10: memref<1x24xf32, #tpu.memory_space<vmem>>, %arg11: memref<16x24xf32, #tpu.memory_space<vmem>>, %arg12: memref<2x32xf32, #tpu.memory_space<vmem>>, %arg13: memref<2x8x12xf32, #tpu.memory_space<vmem>>) attributes {dimension_semantics = [#tpu.dimension_semantics<arbitrary>], iteration_bounds = array<i64: 1>, scalar_prefetch = 0 : i64, scratch_operands = 0 : i64, tpu.core_type = #tpu.core_type<tc>, window_params = [{pipeline_mode = #tpu.pipeline_mode<synchronous>, transform_indices = @transform_0, window_bounds = array<i64: 16, 16>}, {pipeline_mode = #tpu.pipeline_mode<synchronous>, transform_indices = @transform_1, window_bounds = array<i64: 2, 32>}, {pipeline_mode = #tpu.pipeline_mode<synchronous>, transform_indices = @transform_2, window_bounds = array<i64: 2, 12, 32>}, {pipeline_mode = #tpu.pipeline_mode<synchronous>, transform_indices = @transform_3, window_bounds = array<i64: 2, 32, 12>}, {pipeline_mode = #tpu.pipeline_mode<synchronous>, transform_indices = @transform_4, window_bounds = array<i64: 16, 96>}, {pipeline_mode = #tpu.pipeline_mode<synchronous>, transform_indices = @transform_5, window_bounds = array<i64: 32, 96>}, {pipeline_mode = #tpu.pipeline_mode<synchronous>, transform_indices = @transform_6, window_bounds = array<i64: 1, 96>}, {pipeline_mode = #tpu.pipeline_mode<synchronous>, transform_indices = @transform_7, window_bounds = array<i64: 1, 96>}, {pipeline_mode = #tpu.pipeline_mode<synchronous>, transform_indices = @transform_8, window_bounds = array<i64: 64, 24>}, {pipeline_mode = #tpu.pipeline_mode<synchronous>, transform_indices = @transform_9, window_bounds = array<i64: 1, 24>}, {pipeline_mode = #tpu.pipeline_mode<synchronous>, transform_indices = @transform_10, window_bounds = array<i64: 16, 24>}, {pipeline_mode = #tpu.pipeline_mode<synchronous>, transform_indices = @transform_11, window_bounds = array<i64: 2, 32>}, {pipeline_mode = #tpu.pipeline_mode<synchronous>, transform_indices = @transform_12, window_bounds = array<i64: 2, 8, 12>}]} {
    %c0 = arith.constant 0 : index
    %c0_0 = arith.constant 0 : index
    %0 = vector.load %arg5[%c0, %c0_0] : memref<16x96xf32, #tpu.memory_space<vmem>>, vector<16x96xf32>
    %c0_1 = arith.constant 0 : index
    %c0_2 = arith.constant 0 : index
    %1 = vector.load %arg6[%c0_1, %c0_2] : memref<32x96xf32, #tpu.memory_space<vmem>>, vector<32x96xf32>
    %c0_3 = arith.constant 0 : index
    %c0_4 = arith.constant 0 : index
    %2 = vector.load %arg7[%c0_3, %c0_4] : memref<1x96xf32, #tpu.memory_space<vmem>>, vector<1x96xf32>
    %c0_5 = arith.constant 0 : index
    %c0_6 = arith.constant 0 : index
    %3 = vector.load %arg8[%c0_5, %c0_6] : memref<1x96xf32, #tpu.memory_space<vmem>>, vector<1x96xf32>
    %c0_7 = arith.constant 0 : index
    %c0_8 = arith.constant 0 : index
    %4 = vector.load %arg1[%c0_7, %c0_8] : memref<16x16xf32, #tpu.memory_space<vmem>>, vector<16x16xf32>
    %cst = arith.constant dense<0.000000e+00> : vector<16x96xf32>
    %5 = tpu.matmul %4, %0, %cst {dimension_numbers = #tpu.dot_dimension_numbers<[1], [0], [0], [1], [0, 0, 1, 1], [], []>} : vector<16x16xf32>, vector<16x96xf32>, vector<16x96xf32> -> vector<16x96xf32>
    %6 = vector.broadcast %2 : vector<1x96xf32> to vector<16x96xf32>
    %7 = arith.addf %5, %6 : vector<16x96xf32>
    %c0_9 = arith.constant 0 : index
    %c0_10 = arith.constant 0 : index
    %8 = vector.load %arg2[%c0_9, %c0_10] : memref<2x32xf32, #tpu.memory_space<vmem>>, vector<2x32xf32>
    %cst_11 = arith.constant dense<0.000000e+00> : vector<2x96xf32>
    %9 = tpu.matmul %8, %1, %cst_11 {dimension_numbers = #tpu.dot_dimension_numbers<[1], [0], [0], [1], [0, 0, 1, 1], [], []>} : vector<2x32xf32>, vector<32x96xf32>, vector<2x96xf32> -> vector<2x96xf32>
    %10 = vector.broadcast %3 : vector<1x96xf32> to vector<2x96xf32>
    %11 = arith.addf %9, %10 : vector<2x96xf32>
    %12 = vector.extract_strided_slice %7 {offsets = [0, 0], sizes = [2, 96], strides = [1, 1]} : vector<16x96xf32> to vector<2x96xf32>
    %13 = vector.extract_strided_slice %12 {offsets = [0, 0], sizes = [2, 32], strides = [1, 1]} : vector<2x96xf32> to vector<2x32xf32>
    %14 = vector.extract_strided_slice %11 {offsets = [0, 0], sizes = [2, 32], strides = [1, 1]} : vector<2x96xf32> to vector<2x32xf32>
    %15 = arith.addf %13, %14 : vector<2x32xf32>
    %16 = arith.negf %15 : vector<2x32xf32>
    %17 = math.exp %16 : vector<2x32xf32>
    %cst_12 = arith.constant 1.000000e+00 : f32
    %18 = vector.broadcast %cst_12 : f32 to vector<2x32xf32>
    %19 = arith.addf %18, %17 : vector<2x32xf32>
    %20 = arith.divf %18, %19 : vector<2x32xf32>
    %21 = vector.extract_strided_slice %12 {offsets = [0, 32], sizes = [2, 32], strides = [1, 1]} : vector<2x96xf32> to vector<2x32xf32>
    %22 = vector.extract_strided_slice %11 {offsets = [0, 32], sizes = [2, 32], strides = [1, 1]} : vector<2x96xf32> to vector<2x32xf32>
    %23 = arith.addf %21, %22 : vector<2x32xf32>
    %24 = arith.negf %23 : vector<2x32xf32>
    %25 = math.exp %24 : vector<2x32xf32>
    %cst_13 = arith.constant 1.000000e+00 : f32
    %26 = vector.broadcast %cst_13 : f32 to vector<2x32xf32>
    %27 = arith.addf %26, %25 : vector<2x32xf32>
    %28 = arith.divf %26, %27 : vector<2x32xf32>
    %29 = vector.extract_strided_slice %12 {offsets = [0, 64], sizes = [2, 32], strides = [1, 1]} : vector<2x96xf32> to vector<2x32xf32>
    %30 = vector.extract_strided_slice %11 {offsets = [0, 64], sizes = [2, 32], strides = [1, 1]} : vector<2x96xf32> to vector<2x32xf32>
    %31 = arith.mulf %20, %30 : vector<2x32xf32>
    %32 = arith.addf %29, %31 : vector<2x32xf32>
    %33 = math.tanh %32 : vector<2x32xf32>
    %cst_14 = arith.constant 1.000000e+00 : f32
    %34 = vector.broadcast %cst_14 : f32 to vector<2x32xf32>
    %35 = arith.subf %34, %28 : vector<2x32xf32>
    %36 = arith.mulf %35, %33 : vector<2x32xf32>
    %37 = arith.mulf %28, %8 : vector<2x32xf32>
    %38 = arith.addf %36, %37 : vector<2x32xf32>
    %cst_15 = arith.constant dense<0.000000e+00> : vector<2x96xf32>
    %39 = tpu.matmul %38, %1, %cst_15 {dimension_numbers = #tpu.dot_dimension_numbers<[1], [0], [0], [1], [0, 0, 1, 1], [], []>} : vector<2x32xf32>, vector<32x96xf32>, vector<2x96xf32> -> vector<2x96xf32>
    %40 = vector.broadcast %3 : vector<1x96xf32> to vector<2x96xf32>
    %41 = arith.addf %39, %40 : vector<2x96xf32>
    %42 = vector.extract_strided_slice %7 {offsets = [2, 0], sizes = [2, 96], strides = [1, 1]} : vector<16x96xf32> to vector<2x96xf32>
    %43 = vector.extract_strided_slice %42 {offsets = [0, 0], sizes = [2, 32], strides = [1, 1]} : vector<2x96xf32> to vector<2x32xf32>
    %44 = vector.extract_strided_slice %41 {offsets = [0, 0], sizes = [2, 32], strides = [1, 1]} : vector<2x96xf32> to vector<2x32xf32>
    %45 = arith.addf %43, %44 : vector<2x32xf32>
    %46 = arith.negf %45 : vector<2x32xf32>
    %47 = math.exp %46 : vector<2x32xf32>
    %cst_16 = arith.constant 1.000000e+00 : f32
    %48 = vector.broadcast %cst_16 : f32 to vector<2x32xf32>
    %49 = arith.addf %48, %47 : vector<2x32xf32>
    %50 = arith.divf %48, %49 : vector<2x32xf32>
    %51 = vector.extract_strided_slice %42 {offsets = [0, 32], sizes = [2, 32], strides = [1, 1]} : vector<2x96xf32> to vector<2x32xf32>
    %52 = vector.extract_strided_slice %41 {offsets = [0, 32], sizes = [2, 32], strides = [1, 1]} : vector<2x96xf32> to vector<2x32xf32>
    %53 = arith.addf %51, %52 : vector<2x32xf32>
    %54 = arith.negf %53 : vector<2x32xf32>
    %55 = math.exp %54 : vector<2x32xf32>
    %cst_17 = arith.constant 1.000000e+00 : f32
    %56 = vector.broadcast %cst_17 : f32 to vector<2x32xf32>
    %57 = arith.addf %56, %55 : vector<2x32xf32>
    %58 = arith.divf %56, %57 : vector<2x32xf32>
    %59 = vector.extract_strided_slice %42 {offsets = [0, 64], sizes = [2, 32], strides = [1, 1]} : vector<2x96xf32> to vector<2x32xf32>
    %60 = vector.extract_strided_slice %41 {offsets = [0, 64], sizes = [2, 32], strides = [1, 1]} : vector<2x96xf32> to vector<2x32xf32>
    %61 = arith.mulf %50, %60 : vector<2x32xf32>
    %62 = arith.addf %59, %61 : vector<2x32xf32>
    %63 = math.tanh %62 : vector<2x32xf32>
    %cst_18 = arith.constant 1.000000e+00 : f32
    %64 = vector.broadcast %cst_18 : f32 to vector<2x32xf32>
    %65 = arith.subf %64, %58 : vector<2x32xf32>
    %66 = arith.mulf %65, %63 : vector<2x32xf32>
    %67 = arith.mulf %58, %38 : vector<2x32xf32>
    %68 = arith.addf %66, %67 : vector<2x32xf32>
    %cst_19 = arith.constant dense<0.000000e+00> : vector<2x96xf32>
    %69 = tpu.matmul %68, %1, %cst_19 {dimension_numbers = #tpu.dot_dimension_numbers<[1], [0], [0], [1], [0, 0, 1, 1], [], []>} : vector<2x32xf32>, vector<32x96xf32>, vector<2x96xf32> -> vector<2x96xf32>
    %70 = vector.broadcast %3 : vector<1x96xf32> to vector<2x96xf32>
    %71 = arith.addf %69, %70 : vector<2x96xf32>
    %72 = vector.extract_strided_slice %7 {offsets = [4, 0], sizes = [2, 96], strides = [1, 1]} : vector<16x96xf32> to vector<2x96xf32>
    %73 = vector.extract_strided_slice %72 {offsets = [0, 0], sizes = [2, 32], strides = [1, 1]} : vector<2x96xf32> to vector<2x32xf32>
    %74 = vector.extract_strided_slice %71 {offsets = [0, 0], sizes = [2, 32], strides = [1, 1]} : vector<2x96xf32> to vector<2x32xf32>
    %75 = arith.addf %73, %74 : vector<2x32xf32>
    %76 = arith.negf %75 : vector<2x32xf32>
    %77 = math.exp %76 : vector<2x32xf32>
    %cst_20 = arith.constant 1.000000e+00 : f32
    %78 = vector.broadcast %cst_20 : f32 to vector<2x32xf32>
    %79 = arith.addf %78, %77 : vector<2x32xf32>
    %80 = arith.divf %78, %79 : vector<2x32xf32>
    %81 = vector.extract_strided_slice %72 {offsets = [0, 32], sizes = [2, 32], strides = [1, 1]} : vector<2x96xf32> to vector<2x32xf32>
    %82 = vector.extract_strided_slice %71 {offsets = [0, 32], sizes = [2, 32], strides = [1, 1]} : vector<2x96xf32> to vector<2x32xf32>
    %83 = arith.addf %81, %82 : vector<2x32xf32>
    %84 = arith.negf %83 : vector<2x32xf32>
    %85 = math.exp %84 : vector<2x32xf32>
    %cst_21 = arith.constant 1.000000e+00 : f32
    %86 = vector.broadcast %cst_21 : f32 to vector<2x32xf32>
    %87 = arith.addf %86, %85 : vector<2x32xf32>
    %88 = arith.divf %86, %87 : vector<2x32xf32>
    %89 = vector.extract_strided_slice %72 {offsets = [0, 64], sizes = [2, 32], strides = [1, 1]} : vector<2x96xf32> to vector<2x32xf32>
    %90 = vector.extract_strided_slice %71 {offsets = [0, 64], sizes = [2, 32], strides = [1, 1]} : vector<2x96xf32> to vector<2x32xf32>
    %91 = arith.mulf %80, %90 : vector<2x32xf32>
    %92 = arith.addf %89, %91 : vector<2x32xf32>
    %93 = math.tanh %92 : vector<2x32xf32>
    %cst_22 = arith.constant 1.000000e+00 : f32
    %94 = vector.broadcast %cst_22 : f32 to vector<2x32xf32>
    %95 = arith.subf %94, %88 : vector<2x32xf32>
    %96 = arith.mulf %95, %93 : vector<2x32xf32>
    %97 = arith.mulf %88, %68 : vector<2x32xf32>
    %98 = arith.addf %96, %97 : vector<2x32xf32>
    %cst_23 = arith.constant dense<0.000000e+00> : vector<2x96xf32>
    %99 = tpu.matmul %98, %1, %cst_23 {dimension_numbers = #tpu.dot_dimension_numbers<[1], [0], [0], [1], [0, 0, 1, 1], [], []>} : vector<2x32xf32>, vector<32x96xf32>, vector<2x96xf32> -> vector<2x96xf32>
    %100 = vector.broadcast %3 : vector<1x96xf32> to vector<2x96xf32>
    %101 = arith.addf %99, %100 : vector<2x96xf32>
    %102 = vector.extract_strided_slice %7 {offsets = [6, 0], sizes = [2, 96], strides = [1, 1]} : vector<16x96xf32> to vector<2x96xf32>
    %103 = vector.extract_strided_slice %102 {offsets = [0, 0], sizes = [2, 32], strides = [1, 1]} : vector<2x96xf32> to vector<2x32xf32>
    %104 = vector.extract_strided_slice %101 {offsets = [0, 0], sizes = [2, 32], strides = [1, 1]} : vector<2x96xf32> to vector<2x32xf32>
    %105 = arith.addf %103, %104 : vector<2x32xf32>
    %106 = arith.negf %105 : vector<2x32xf32>
    %107 = math.exp %106 : vector<2x32xf32>
    %cst_24 = arith.constant 1.000000e+00 : f32
    %108 = vector.broadcast %cst_24 : f32 to vector<2x32xf32>
    %109 = arith.addf %108, %107 : vector<2x32xf32>
    %110 = arith.divf %108, %109 : vector<2x32xf32>
    %111 = vector.extract_strided_slice %102 {offsets = [0, 32], sizes = [2, 32], strides = [1, 1]} : vector<2x96xf32> to vector<2x32xf32>
    %112 = vector.extract_strided_slice %101 {offsets = [0, 32], sizes = [2, 32], strides = [1, 1]} : vector<2x96xf32> to vector<2x32xf32>
    %113 = arith.addf %111, %112 : vector<2x32xf32>
    %114 = arith.negf %113 : vector<2x32xf32>
    %115 = math.exp %114 : vector<2x32xf32>
    %cst_25 = arith.constant 1.000000e+00 : f32
    %116 = vector.broadcast %cst_25 : f32 to vector<2x32xf32>
    %117 = arith.addf %116, %115 : vector<2x32xf32>
    %118 = arith.divf %116, %117 : vector<2x32xf32>
    %119 = vector.extract_strided_slice %102 {offsets = [0, 64], sizes = [2, 32], strides = [1, 1]} : vector<2x96xf32> to vector<2x32xf32>
    %120 = vector.extract_strided_slice %101 {offsets = [0, 64], sizes = [2, 32], strides = [1, 1]} : vector<2x96xf32> to vector<2x32xf32>
    %121 = arith.mulf %110, %120 : vector<2x32xf32>
    %122 = arith.addf %119, %121 : vector<2x32xf32>
    %123 = math.tanh %122 : vector<2x32xf32>
    %cst_26 = arith.constant 1.000000e+00 : f32
    %124 = vector.broadcast %cst_26 : f32 to vector<2x32xf32>
    %125 = arith.subf %124, %118 : vector<2x32xf32>
    %126 = arith.mulf %125, %123 : vector<2x32xf32>
    %127 = arith.mulf %118, %98 : vector<2x32xf32>
    %128 = arith.addf %126, %127 : vector<2x32xf32>
    %cst_27 = arith.constant dense<0.000000e+00> : vector<2x96xf32>
    %129 = tpu.matmul %128, %1, %cst_27 {dimension_numbers = #tpu.dot_dimension_numbers<[1], [0], [0], [1], [0, 0, 1, 1], [], []>} : vector<2x32xf32>, vector<32x96xf32>, vector<2x96xf32> -> vector<2x96xf32>
    %130 = vector.broadcast %3 : vector<1x96xf32> to vector<2x96xf32>
    %131 = arith.addf %129, %130 : vector<2x96xf32>
    %132 = vector.extract_strided_slice %7 {offsets = [8, 0], sizes = [2, 96], strides = [1, 1]} : vector<16x96xf32> to vector<2x96xf32>
    %133 = vector.extract_strided_slice %132 {offsets = [0, 0], sizes = [2, 32], strides = [1, 1]} : vector<2x96xf32> to vector<2x32xf32>
    %134 = vector.extract_strided_slice %131 {offsets = [0, 0], sizes = [2, 32], strides = [1, 1]} : vector<2x96xf32> to vector<2x32xf32>
    %135 = arith.addf %133, %134 : vector<2x32xf32>
    %136 = arith.negf %135 : vector<2x32xf32>
    %137 = math.exp %136 : vector<2x32xf32>
    %cst_28 = arith.constant 1.000000e+00 : f32
    %138 = vector.broadcast %cst_28 : f32 to vector<2x32xf32>
    %139 = arith.addf %138, %137 : vector<2x32xf32>
    %140 = arith.divf %138, %139 : vector<2x32xf32>
    %141 = vector.extract_strided_slice %132 {offsets = [0, 32], sizes = [2, 32], strides = [1, 1]} : vector<2x96xf32> to vector<2x32xf32>
    %142 = vector.extract_strided_slice %131 {offsets = [0, 32], sizes = [2, 32], strides = [1, 1]} : vector<2x96xf32> to vector<2x32xf32>
    %143 = arith.addf %141, %142 : vector<2x32xf32>
    %144 = arith.negf %143 : vector<2x32xf32>
    %145 = math.exp %144 : vector<2x32xf32>
    %cst_29 = arith.constant 1.000000e+00 : f32
    %146 = vector.broadcast %cst_29 : f32 to vector<2x32xf32>
    %147 = arith.addf %146, %145 : vector<2x32xf32>
    %148 = arith.divf %146, %147 : vector<2x32xf32>
    %149 = vector.extract_strided_slice %132 {offsets = [0, 64], sizes = [2, 32], strides = [1, 1]} : vector<2x96xf32> to vector<2x32xf32>
    %150 = vector.extract_strided_slice %131 {offsets = [0, 64], sizes = [2, 32], strides = [1, 1]} : vector<2x96xf32> to vector<2x32xf32>
    %151 = arith.mulf %140, %150 : vector<2x32xf32>
    %152 = arith.addf %149, %151 : vector<2x32xf32>
    %153 = math.tanh %152 : vector<2x32xf32>
    %cst_30 = arith.constant 1.000000e+00 : f32
    %154 = vector.broadcast %cst_30 : f32 to vector<2x32xf32>
    %155 = arith.subf %154, %148 : vector<2x32xf32>
    %156 = arith.mulf %155, %153 : vector<2x32xf32>
    %157 = arith.mulf %148, %128 : vector<2x32xf32>
    %158 = arith.addf %156, %157 : vector<2x32xf32>
    %cst_31 = arith.constant dense<0.000000e+00> : vector<2x96xf32>
    %159 = tpu.matmul %158, %1, %cst_31 {dimension_numbers = #tpu.dot_dimension_numbers<[1], [0], [0], [1], [0, 0, 1, 1], [], []>} : vector<2x32xf32>, vector<32x96xf32>, vector<2x96xf32> -> vector<2x96xf32>
    %160 = vector.broadcast %3 : vector<1x96xf32> to vector<2x96xf32>
    %161 = arith.addf %159, %160 : vector<2x96xf32>
    %162 = vector.extract_strided_slice %7 {offsets = [10, 0], sizes = [2, 96], strides = [1, 1]} : vector<16x96xf32> to vector<2x96xf32>
    %163 = vector.extract_strided_slice %162 {offsets = [0, 0], sizes = [2, 32], strides = [1, 1]} : vector<2x96xf32> to vector<2x32xf32>
    %164 = vector.extract_strided_slice %161 {offsets = [0, 0], sizes = [2, 32], strides = [1, 1]} : vector<2x96xf32> to vector<2x32xf32>
    %165 = arith.addf %163, %164 : vector<2x32xf32>
    %166 = arith.negf %165 : vector<2x32xf32>
    %167 = math.exp %166 : vector<2x32xf32>
    %cst_32 = arith.constant 1.000000e+00 : f32
    %168 = vector.broadcast %cst_32 : f32 to vector<2x32xf32>
    %169 = arith.addf %168, %167 : vector<2x32xf32>
    %170 = arith.divf %168, %169 : vector<2x32xf32>
    %171 = vector.extract_strided_slice %162 {offsets = [0, 32], sizes = [2, 32], strides = [1, 1]} : vector<2x96xf32> to vector<2x32xf32>
    %172 = vector.extract_strided_slice %161 {offsets = [0, 32], sizes = [2, 32], strides = [1, 1]} : vector<2x96xf32> to vector<2x32xf32>
    %173 = arith.addf %171, %172 : vector<2x32xf32>
    %174 = arith.negf %173 : vector<2x32xf32>
    %175 = math.exp %174 : vector<2x32xf32>
    %cst_33 = arith.constant 1.000000e+00 : f32
    %176 = vector.broadcast %cst_33 : f32 to vector<2x32xf32>
    %177 = arith.addf %176, %175 : vector<2x32xf32>
    %178 = arith.divf %176, %177 : vector<2x32xf32>
    %179 = vector.extract_strided_slice %162 {offsets = [0, 64], sizes = [2, 32], strides = [1, 1]} : vector<2x96xf32> to vector<2x32xf32>
    %180 = vector.extract_strided_slice %161 {offsets = [0, 64], sizes = [2, 32], strides = [1, 1]} : vector<2x96xf32> to vector<2x32xf32>
    %181 = arith.mulf %170, %180 : vector<2x32xf32>
    %182 = arith.addf %179, %181 : vector<2x32xf32>
    %183 = math.tanh %182 : vector<2x32xf32>
    %cst_34 = arith.constant 1.000000e+00 : f32
    %184 = vector.broadcast %cst_34 : f32 to vector<2x32xf32>
    %185 = arith.subf %184, %178 : vector<2x32xf32>
    %186 = arith.mulf %185, %183 : vector<2x32xf32>
    %187 = arith.mulf %178, %158 : vector<2x32xf32>
    %188 = arith.addf %186, %187 : vector<2x32xf32>
    %cst_35 = arith.constant dense<0.000000e+00> : vector<2x96xf32>
    %189 = tpu.matmul %188, %1, %cst_35 {dimension_numbers = #tpu.dot_dimension_numbers<[1], [0], [0], [1], [0, 0, 1, 1], [], []>} : vector<2x32xf32>, vector<32x96xf32>, vector<2x96xf32> -> vector<2x96xf32>
    %190 = vector.broadcast %3 : vector<1x96xf32> to vector<2x96xf32>
    %191 = arith.addf %189, %190 : vector<2x96xf32>
    %192 = vector.extract_strided_slice %7 {offsets = [12, 0], sizes = [2, 96], strides = [1, 1]} : vector<16x96xf32> to vector<2x96xf32>
    %193 = vector.extract_strided_slice %192 {offsets = [0, 0], sizes = [2, 32], strides = [1, 1]} : vector<2x96xf32> to vector<2x32xf32>
    %194 = vector.extract_strided_slice %191 {offsets = [0, 0], sizes = [2, 32], strides = [1, 1]} : vector<2x96xf32> to vector<2x32xf32>
    %195 = arith.addf %193, %194 : vector<2x32xf32>
    %196 = arith.negf %195 : vector<2x32xf32>
    %197 = math.exp %196 : vector<2x32xf32>
    %cst_36 = arith.constant 1.000000e+00 : f32
    %198 = vector.broadcast %cst_36 : f32 to vector<2x32xf32>
    %199 = arith.addf %198, %197 : vector<2x32xf32>
    %200 = arith.divf %198, %199 : vector<2x32xf32>
    %201 = vector.extract_strided_slice %192 {offsets = [0, 32], sizes = [2, 32], strides = [1, 1]} : vector<2x96xf32> to vector<2x32xf32>
    %202 = vector.extract_strided_slice %191 {offsets = [0, 32], sizes = [2, 32], strides = [1, 1]} : vector<2x96xf32> to vector<2x32xf32>
    %203 = arith.addf %201, %202 : vector<2x32xf32>
    %204 = arith.negf %203 : vector<2x32xf32>
    %205 = math.exp %204 : vector<2x32xf32>
    %cst_37 = arith.constant 1.000000e+00 : f32
    %206 = vector.broadcast %cst_37 : f32 to vector<2x32xf32>
    %207 = arith.addf %206, %205 : vector<2x32xf32>
    %208 = arith.divf %206, %207 : vector<2x32xf32>
    %209 = vector.extract_strided_slice %192 {offsets = [0, 64], sizes = [2, 32], strides = [1, 1]} : vector<2x96xf32> to vector<2x32xf32>
    %210 = vector.extract_strided_slice %191 {offsets = [0, 64], sizes = [2, 32], strides = [1, 1]} : vector<2x96xf32> to vector<2x32xf32>
    %211 = arith.mulf %200, %210 : vector<2x32xf32>
    %212 = arith.addf %209, %211 : vector<2x32xf32>
    %213 = math.tanh %212 : vector<2x32xf32>
    %cst_38 = arith.constant 1.000000e+00 : f32
    %214 = vector.broadcast %cst_38 : f32 to vector<2x32xf32>
    %215 = arith.subf %214, %208 : vector<2x32xf32>
    %216 = arith.mulf %215, %213 : vector<2x32xf32>
    %217 = arith.mulf %208, %188 : vector<2x32xf32>
    %218 = arith.addf %216, %217 : vector<2x32xf32>
    %cst_39 = arith.constant dense<0.000000e+00> : vector<2x96xf32>
    %219 = tpu.matmul %218, %1, %cst_39 {dimension_numbers = #tpu.dot_dimension_numbers<[1], [0], [0], [1], [0, 0, 1, 1], [], []>} : vector<2x32xf32>, vector<32x96xf32>, vector<2x96xf32> -> vector<2x96xf32>
    %220 = vector.broadcast %3 : vector<1x96xf32> to vector<2x96xf32>
    %221 = arith.addf %219, %220 : vector<2x96xf32>
    %222 = vector.extract_strided_slice %7 {offsets = [14, 0], sizes = [2, 96], strides = [1, 1]} : vector<16x96xf32> to vector<2x96xf32>
    %223 = vector.extract_strided_slice %222 {offsets = [0, 0], sizes = [2, 32], strides = [1, 1]} : vector<2x96xf32> to vector<2x32xf32>
    %224 = vector.extract_strided_slice %221 {offsets = [0, 0], sizes = [2, 32], strides = [1, 1]} : vector<2x96xf32> to vector<2x32xf32>
    %225 = arith.addf %223, %224 : vector<2x32xf32>
    %226 = arith.negf %225 : vector<2x32xf32>
    %227 = math.exp %226 : vector<2x32xf32>
    %cst_40 = arith.constant 1.000000e+00 : f32
    %228 = vector.broadcast %cst_40 : f32 to vector<2x32xf32>
    %229 = arith.addf %228, %227 : vector<2x32xf32>
    %230 = arith.divf %228, %229 : vector<2x32xf32>
    %231 = vector.extract_strided_slice %222 {offsets = [0, 32], sizes = [2, 32], strides = [1, 1]} : vector<2x96xf32> to vector<2x32xf32>
    %232 = vector.extract_strided_slice %221 {offsets = [0, 32], sizes = [2, 32], strides = [1, 1]} : vector<2x96xf32> to vector<2x32xf32>
    %233 = arith.addf %231, %232 : vector<2x32xf32>
    %234 = arith.negf %233 : vector<2x32xf32>
    %235 = math.exp %234 : vector<2x32xf32>
    %cst_41 = arith.constant 1.000000e+00 : f32
    %236 = vector.broadcast %cst_41 : f32 to vector<2x32xf32>
    %237 = arith.addf %236, %235 : vector<2x32xf32>
    %238 = arith.divf %236, %237 : vector<2x32xf32>
    %239 = vector.extract_strided_slice %222 {offsets = [0, 64], sizes = [2, 32], strides = [1, 1]} : vector<2x96xf32> to vector<2x32xf32>
    %240 = vector.extract_strided_slice %221 {offsets = [0, 64], sizes = [2, 32], strides = [1, 1]} : vector<2x96xf32> to vector<2x32xf32>
    %241 = arith.mulf %230, %240 : vector<2x32xf32>
    %242 = arith.addf %239, %241 : vector<2x32xf32>
    %243 = math.tanh %242 : vector<2x32xf32>
    %cst_42 = arith.constant 1.000000e+00 : f32
    %244 = vector.broadcast %cst_42 : f32 to vector<2x32xf32>
    %245 = arith.subf %244, %238 : vector<2x32xf32>
    %246 = arith.mulf %245, %243 : vector<2x32xf32>
    %247 = arith.mulf %238, %218 : vector<2x32xf32>
    %248 = arith.addf %246, %247 : vector<2x32xf32>
    %c0_43 = arith.constant 0 : index
    %c0_44 = arith.constant 0 : index
    %249 = vector.load %arg12[%c0_43, %c0_44] : memref<2x32xf32, #tpu.memory_space<vmem>>, vector<2x32xf32>
    tpu.vector_store %arg12[%c0_43, %c0_44], %248 {strides = array<i32>} : memref<2x32xf32, #tpu.memory_space<vmem>>, vector<2x32xf32>,
    %250 = vector.shape_cast %38 : vector<2x32xf32> to vector<2x1x32xf32>
    %251 = vector.shape_cast %68 : vector<2x32xf32> to vector<2x1x32xf32>
    %252 = vector.shape_cast %98 : vector<2x32xf32> to vector<2x1x32xf32>
    %253 = vector.shape_cast %128 : vector<2x32xf32> to vector<2x1x32xf32>
    %254 = vector.shape_cast %158 : vector<2x32xf32> to vector<2x1x32xf32>
    %255 = vector.shape_cast %188 : vector<2x32xf32> to vector<2x1x32xf32>
    %256 = vector.shape_cast %218 : vector<2x32xf32> to vector<2x1x32xf32>
    %257 = vector.shape_cast %248 : vector<2x32xf32> to vector<2x1x32xf32>
    %258 = tpu.concatenate %250, %251, %252, %253, %254, %255, %256, %257 in 1 : vector<2x1x32xf32>, vector<2x1x32xf32>, vector<2x1x32xf32>, vector<2x1x32xf32>, vector<2x1x32xf32>, vector<2x1x32xf32>, vector<2x1x32xf32>, vector<2x1x32xf32> -> vector<2x8x32xf32>
    %c0_45 = arith.constant 0 : index
    %c0_46 = arith.constant 0 : index
    %c0_47 = arith.constant 0 : index
    %259 = vector.load %arg3[%c0_45, %c0_46, %c0_47] : memref<2x12x32xf32, #tpu.memory_space<vmem>>, vector<2x12x32xf32>
    %c0_48 = arith.constant 0 : index
    %c0_49 = arith.constant 0 : index
    %c0_50 = arith.constant 0 : index
    %260 = vector.load %arg4[%c0_48, %c0_49, %c0_50] : memref<2x32x12xf32, #tpu.memory_space<vmem>>, vector<2x32x12xf32>
    "tpu.trace_start"() <{level = 10 : i32, message = "btd,bdj->btj"}> : () -> ()
    %cst_51 = arith.constant dense<0.000000e+00> : vector<2x8x12xf32>
    %261 = tpu.matmul %258, %260, %cst_51 {dimension_numbers = #tpu.dot_dimension_numbers<[2], [1], [1], [2], [0, 0, 0, 1, 1, 2], [0], [0]>} : vector<2x8x32xf32>, vector<2x32x12xf32>, vector<2x8x12xf32> -> vector<2x8x12xf32>
    "tpu.trace_stop"() : () -> ()
    %cst_52 = arith.constant dense<0xFF800000> : vector<2x8xf32>
    %262 = vector.multi_reduction <maximumf>, %261, %cst_52 [2] : vector<2x8x12xf32> to vector<2x8xf32>
    %263 = vector.shape_cast %262 : vector<2x8xf32> to vector<2x8x1xf32>
    %264 = vector.broadcast %263 : vector<2x8x1xf32> to vector<2x8x12xf32>
    %265 = arith.subf %261, %264 : vector<2x8x12xf32>
    %266 = math.exp %265 : vector<2x8x12xf32>
    %cst_53 = arith.constant dense<0.000000e+00> : vector<2x8xf32>
    %267 = vector.multi_reduction <add>, %266, %cst_53 [2] : vector<2x8x12xf32> to vector<2x8xf32>
    %268 = vector.shape_cast %267 : vector<2x8xf32> to vector<2x8x1xf32>
    %269 = tpu.reciprocal %268 : vector<2x8x1xf32> -> vector<2x8x1xf32>
    %270 = vector.broadcast %269 : vector<2x8x1xf32> to vector<2x8x12xf32>
    %271 = arith.mulf %266, %270 : vector<2x8x12xf32>
    %c0_54 = arith.constant 0 : index
    %c0_55 = arith.constant 0 : index
    %c0_56 = arith.constant 0 : index
    %272 = vector.load %arg13[%c0_54, %c0_55, %c0_56] : memref<2x8x12xf32, #tpu.memory_space<vmem>>, vector<2x8x12xf32>
    tpu.vector_store %arg13[%c0_54, %c0_55, %c0_56], %271 {strides = array<i32>} : memref<2x8x12xf32, #tpu.memory_space<vmem>>, vector<2x8x12xf32>,
    "tpu.trace_start"() <{level = 10 : i32, message = "btj,bjd->btd"}> : () -> ()
    %cst_57 = arith.constant dense<0.000000e+00> : vector<2x8x32xf32>
    %273 = tpu.matmul %271, %259, %cst_57 {dimension_numbers = #tpu.dot_dimension_numbers<[2], [1], [1], [2], [0, 0, 0, 1, 1, 2], [0], [0]>} : vector<2x8x12xf32>, vector<2x12x32xf32>, vector<2x8x32xf32> -> vector<2x8x32xf32>
    "tpu.trace_stop"() : () -> ()
    %274 = vector.shape_cast %258 : vector<2x8x32xf32> to vector<16x32xf32>
    %275 = vector.shape_cast %273 : vector<2x8x32xf32> to vector<16x32xf32>
    %276 = tpu.concatenate %274, %275 in 1 : vector<16x32xf32>, vector<16x32xf32> -> vector<16x64xf32>
    %c0_58 = arith.constant 0 : index
    %c0_59 = arith.constant 0 : index
    %277 = vector.load %arg9[%c0_58, %c0_59] : memref<64x24xf32, #tpu.memory_space<vmem>>, vector<64x24xf32>
    %cst_60 = arith.constant dense<0.000000e+00> : vector<16x24xf32>
    %278 = tpu.matmul %276, %277, %cst_60 {dimension_numbers = #tpu.dot_dimension_numbers<[1], [0], [0], [1], [0, 0, 1, 1], [], []>} : vector<16x64xf32>, vector<64x24xf32>, vector<16x24xf32> -> vector<16x24xf32>
    %c0_61 = arith.constant 0 : index
    %c0_62 = arith.constant 0 : index
    %279 = vector.load %arg10[%c0_61, %c0_62] : memref<1x24xf32, #tpu.memory_space<vmem>>, vector<1x24xf32>
    %280 = vector.broadcast %279 : vector<1x24xf32> to vector<16x24xf32>
    %281 = arith.addf %278, %280 : vector<16x24xf32>
    %c0_63 = arith.constant 0 : index
    %c0_64 = arith.constant 0 : index
    %282 = vector.load %arg11[%c0_63, %c0_64] : memref<16x24xf32, #tpu.memory_space<vmem>>, vector<16x24xf32>
    tpu.vector_store %arg11[%c0_63, %c0_64], %281 {strides = array<i32>} : memref<16x24xf32, #tpu.memory_space<vmem>>, vector<16x24xf32>,
    return
  }
  func.func @transform_0(%arg0: i32) -> (i32, i32) {
    %c0_i32 = arith.constant 0 : i32
    %c0_i32_0 = arith.constant 0 : i32
    %c0_i32_1 = arith.constant 0 : i32
    return %c0_i32, %c0_i32_0 : i32, i32
  }
  func.func @transform_1(%arg0: i32) -> (i32, i32) {
    %c0_i32 = arith.constant 0 : i32
    %c0_i32_0 = arith.constant 0 : i32
    %c0_i32_1 = arith.constant 0 : i32
    return %c0_i32, %c0_i32_0 : i32, i32
  }
  func.func @transform_2(%arg0: i32) -> (i32, i32, i32) {
    %c0_i32 = arith.constant 0 : i32
    %c0_i32_0 = arith.constant 0 : i32
    %c0_i32_1 = arith.constant 0 : i32
    %c0_i32_2 = arith.constant 0 : i32
    return %c0_i32, %c0_i32_0, %c0_i32_1 : i32, i32, i32
  }
  func.func @transform_3(%arg0: i32) -> (i32, i32, i32) {
    %c0_i32 = arith.constant 0 : i32
    %c0_i32_0 = arith.constant 0 : i32
    %c0_i32_1 = arith.constant 0 : i32
    %c0_i32_2 = arith.constant 0 : i32
    return %c0_i32, %c0_i32_0, %c0_i32_1 : i32, i32, i32
  }
  func.func @transform_4(%arg0: i32) -> (i32, i32) {
    %c0_i32 = arith.constant 0 : i32
    %c0_i32_0 = arith.constant 0 : i32
    %c0_i32_1 = arith.constant 0 : i32
    return %c0_i32, %c0_i32_0 : i32, i32
  }
  func.func @transform_5(%arg0: i32) -> (i32, i32) {
    %c0_i32 = arith.constant 0 : i32
    %c0_i32_0 = arith.constant 0 : i32
    %c0_i32_1 = arith.constant 0 : i32
    return %c0_i32, %c0_i32_0 : i32, i32
  }
  func.func @transform_6(%arg0: i32) -> (i32, i32) {
    %c0_i32 = arith.constant 0 : i32
    %c0_i32_0 = arith.constant 0 : i32
    %c0_i32_1 = arith.constant 0 : i32
    return %c0_i32, %c0_i32_0 : i32, i32
  }
  func.func @transform_7(%arg0: i32) -> (i32, i32) {
    %c0_i32 = arith.constant 0 : i32
    %c0_i32_0 = arith.constant 0 : i32
    %c0_i32_1 = arith.constant 0 : i32
    return %c0_i32, %c0_i32_0 : i32, i32
  }
  func.func @transform_8(%arg0: i32) -> (i32, i32) {
    %c0_i32 = arith.constant 0 : i32
    %c0_i32_0 = arith.constant 0 : i32
    %c0_i32_1 = arith.constant 0 : i32
    return %c0_i32, %c0_i32_0 : i32, i32
  }
  func.func @transform_9(%arg0: i32) -> (i32, i32) {
    %c0_i32 = arith.constant 0 : i32
    %c0_i32_0 = arith.constant 0 : i32
    %c0_i32_1 = arith.constant 0 : i32
    return %c0_i32, %c0_i32_0 : i32, i32
  }
  func.func @transform_10(%arg0: i32) -> (i32, i32) {
    %c0_i32 = arith.constant 0 : i32
    %c0_i32_0 = arith.constant 0 : i32
    %c0_i32_1 = arith.constant 0 : i32
    return %c0_i32, %c0_i32_0 : i32, i32
  }
  func.func @transform_11(%arg0: i32) -> (i32, i32) {
    %c0_i32 = arith.constant 0 : i32
    %c0_i32_0 = arith.constant 0 : i32
    %c0_i32_1 = arith.constant 0 : i32
    return %c0_i32, %c0_i32_0 : i32, i32
  }
  func.func @transform_12(%arg0: i32) -> (i32, i32, i32) {
    %c0_i32 = arith.constant 0 : i32
    %c0_i32_0 = arith.constant 0 : i32
    %c0_i32_1 = arith.constant 0 : i32
    %c0_i32_2 = arith.constant 0 : i32
    return %c0_i32, %c0_i32_0, %c0_i32_1 : i32, i32, i32
  }
}

</mosaic_0001>

<bundles_post_ra>
// kernel: tpu_custom_call.1
= control target key start
LH: loop header
LB: loop body
LE: loop exit
PB: predicated region body
PF: predicated region fallthrough
CT: control target
= control target key end

     0   :  { %18 = vsyncpa [#allocation3], 0  ;;  %vm56_vm0 = vcmask 130048   ;;  %v2244_v6 = vmov 0.0|0.0   ;;  %vm2245_vm1 = vmmov 0   ;;  %v2246_v8 = vmov 0.0   ;;  %s2670_s0 = inlined_call_operand.vmem [shape: f32[16,16], index: 0, kind: input, shape index: {}]   ;;  %s2671_s1 = inlined_call_operand.vmem [shape: f32[2,32], index: 1, kind: input, shape index: {}]   ;;  %s2672_s2 = inlined_call_operand.vmem [shape: f32[2,12,32], index: 2, kind: input, shape index: {}]   ;;  %s2673_s3 = inlined_call_operand.vmem [shape: f32[2,32,12], index: 3, kind: input, shape index: {}]   ;;  %s2674_s4 = inlined_call_operand.vmem [shape: f32[16,96], index: 4, kind: input, shape index: {}]   ;;  %s2675_s5 = inlined_call_operand.vmem [shape: f32[32,96], index: 5, kind: input, shape index: {}]   ;;  %s2676_s6 = inlined_call_operand.vmem [shape: f32[1,96], index: 6, kind: input, shape index: {}]   ;;  %s2677_s7 = inlined_call_operand.vmem [shape: f32[1,96], index: 7, kind: input, shape index: {}]   ;;  %s2678_s8 = inlined_call_operand.vmem [shape: f32[64,24], index: 8, kind: input, shape index: {}]   ;;  %s2679_s9 = inlined_call_operand.vmem [shape: f32[1,24], index: 9, kind: input, shape index: {}]   ;;  %s2680_s10 = inlined_call_operand.hbm [shape: f32[16,24], index: 10, kind: output, shape index: {0}]   ;;  %s2681_s11 = inlined_call_operand.hbm [shape: f32[2,32], index: 11, kind: output, shape index: {1}]   ;;  %s2682_s12 = inlined_call_operand.hbm [shape: f32[2,8,12], index: 12, kind: output, shape index: {2}]  }
   0x1   :  { %v40_v0 = vld [vmem:[%s2674_s4] sm:$0xff]  ;;  %v41_v1 = vld [vmem:[%s2674_s4 + $0x8] sm:$0xff]  ;;  %2033 = vmatprep.subr.bf16.mxu1 %v2244_v6  ;;  %1904 = vmatprep.mubr.msk.f32.mxu1 %vm2245_vm1, %v2246_v8 }
   0x2   :  { %v48_v2 = vld [vmem:[%s2670_s0] sm:$0xff]  ;;  %v2017_v3 = vpack.c.bf16 %v41_v1, %v40_v0  ;;  %v43_v5 = vld [vmem:[%s2675_s5 + $0x8] sm:$0xff] }
   0x3   :  { %1871 = vmatprep.mubr.msk.f32.mxu0 %vm56_vm0, %v48_v2  ;;  %v42_v4 = vld [vmem:[%s2675_s5] sm:$0xff] }
   0x4   :  { %v2339_v7 = vpack.c.bf16 %v43_v5, %v42_v4  ;;  %2018 = vmatprep.subr.bf16.mxu0 %v2017_v3 }
   0x5   :  { %19 = vsyncpa [#allocation5], 0  ;;  %2020 = vmatpush3.bf16.msra.mxu0 %v2017_v3  ;;  %v49_v9 = vld [vmem:[%s2670_s0 + $0x8] sm:$0xff]  ;;  %v44_v10 = vld [vmem:[%s2675_s5 + $0x10] sm:$0xff]  ;;  %vm145_vm2 = vcmask 261120   ;;  %s2247_s21 = smov 64   ;;  %v994_v56 = vlaneseq }
   0x6   :  { %v45_v11 = vld [vmem:[%s2675_s5 + $0x18] sm:$0xff]  ;;  %2035 = vmatpush3.bf16.msra.mxu1 %v2339_v7  ;;  %2021 = vmatprep.subr.bf16.mxu0 %v2244_v6  ;;  %v138_v13 = vld [vmem:[%s2671_s1] sm:$0x3]  ;;  %v2250_v54 = vmov 1966171168   ;;  %vm1251_vm3 = vcmask 1040384  }
   0x7   :  { %2036 = vmatprep.subr.bf16.mxu1 %v2244_v6  ;;  %v2356_v12 = vpack.c.bf16 %v45_v11, %v44_v10  ;;  %v1768_v14 = vld [vmem:[%s2676_s6] ss:$0 sm:$0xff]  ;;  %s2248_s6 = smov 96   ;;  %v992_v55 = vunpack.c.l.s4 %v2250_v54  ;;  %v995_v58 = vshrl.u32 %v994_v56, 7  ;;  %vm1254_vm4 = vcmask 1041408  }
   0x8   :  { %1872 = vmatmul.mubr.msk.f32.vlgmr.msra.gmra.mrb[0].mxu0 %vm56_vm0, %v49_v9  ;;  %v2384_v18 = vld [vmem:[%s2677_s7] ss:$0 sm:$0xff]  ;;  %s2249_s7 = smov 32   ;;  %vm1257_vm5 = vcmask 1042432   ;;  %vm1260_vm6 = vcmask 1043456   ;;  %vm1263_vm7 = vcmask 1044480  }
   0x9   :  { %2023 = vmatpush3.bf16.msra.mxu0 %v2339_v7  ;;  %1882 = vmatprep.mubr.msk.f32.mxu0 %vm2245_vm1, %v2246_v8  ;;  %v993_v57 = vunpack.c.0.s8 %v992_v55  ;;  %v2413_v5 = vsub.s32 0, %v995_v58  ;;  %vm1266_vm8 = vcmask 1045504   ;;  %vm1269_vm9 = vcmask 1046528  }
   0xa   :  { %2024 = vmatprep.subr.bf16.mxu0 %v2244_v6  ;;  %2038 = vmatpush3.bf16.msra.mxu1 %v2356_v12  ;;  %vm1434_vm10 = vcmask 97280   ;;  %vm2251_vm11 = vmmov 1   ;;  %vm1638_vm13 = vcmask 523264   ;;  %vm989_vm14 = vcmask 261126  }
   0xb   :  { %2045 = vmatprep.subr.bf16.mxu1 %v2244_v6  ;;  %v2409_v62 = vsub.s32 %v993_v57, %v995_v58  ;;  %vm2083_vm12 = vmpackc.low %vm1260_vm6, %vm2251_vm11 }
   0xd   :  { %2026 = vmatpush3.bf16.msra.mxu0 %v2356_v12 }
   0xe   :  { %2027 = vmatprep.subr.bf16.mxu0 %v2244_v6 }
  0x10   :  { %1883 = vmatmul.mubr.msk.f32.vlgmr.msra.gmra.mrb[2].mxu0 %vm145_vm2, %v138_v13 }
  0x11   :  { %2029 = vmatpush3.bf16.msra.mxu0 %v2339_v7  ;;  %1893 = vmatprep.mubr.msk.f32.mxu0 %vm2245_vm1, %v2246_v8 }
  0x12   :  { %2030 = vmatprep.subr.bf16.mxu0 %v2244_v6 }
  0x15   :  { %2032 = vmatpush3.bf16.msra.mxu0 %v2356_v12 }
  0x16   :  { %2039 = vmatprep.subr.bf16.mxu0 %v2244_v6 }
  0xdb   :  { %v1873_v15 = vpop.f32.mrb[0].mxu0 }
  0xdc   :  { %v2379_v16 = vadd.f32 %v1873_v15, %v1768_v14  ;;  %v129_v17 = vpop.f32.mrb[1].mxu0 }
  0xdd   :  { %v2388_v22 = vadd.f32 %v1768_v14, %v129_v17 }
  0xe3   :  { %v215_v19 = vpop.f32.mrb[2].mxu0 }
  0xe4   :  { %v216_v20 = vadd.f32 %v2384_v18, %v215_v19  ;;  %v1884_v21 = vpop.f32.mrb[3].mxu0 }
  0xe6   :  { %227 = vrot.lane.b32.xlu0 %v216_v20, %s2247_s21  ;;  %v219_v23 = vadd.f32 %v216_v20, %v2388_v22 }
  0xe8   :  { %v1773_v24 = vmul.f32 -1.442695, %v219_v23 }
  0xea   :  { %2118 = vpow2.f32 %v1773_v24 }
  0xf4   :  { %v2119_v25 = vpop.eup %2118 }
  0xf5   :  { %v223_v26 = vadd.f32 1.0, %v2119_v25 }
  0xf7   :  { %2120 = vrcp.f32 %v223_v26 }
 0x101   :  { %v2121_v27 = vpop.eup %2120 }
 0x102   :  { %v237_v34 = vsub.f32 1.0, %v2121_v27 }
 0x158   :  { %v228_v28 = vpop.permute.xlu0 %227 }
 0x159   :  { %v230_v29 = vmul.f32 %v2121_v27, %v228_v28 }
 0x15b   :  { %232 = vrot.lane.b32.xlu0 %v230_v29, %s2247_s21 }
 0x1cd   :  { %v233_v30 = vpop.permute.xlu0 %232 }
 0x1ce   :  { %v235_v31 = vadd.f32 %v233_v30, %v2388_v22 }
 0x1d0   :  { %2122 = vtanh.f32 %v235_v31 }
 0x1da   :  { %v2123_v32 = vpop.eup %2122 }
 0x1db   :  { %239 = vrot.lane.b32.xlu1 %v2123_v32, %s2248_s6 }
 0x1df   :  { %243 = vrot.lane.b32.xlu1 %v138_v13, %s2249_s7 }
 0x24d   :  { %v240_v33 = vpop.permute.xlu1 %239 }
 0x24e   :  { %v242_v36 = vmul.f32 %v240_v33, %v237_v34 }
 0x251   :  { %v244_v35 = vpop.permute.xlu1 %243 }
 0x252   :  { %v246_v37 = vmul.f32 %v2121_v27, %v244_v35 }
 0x254   :  { %v247_v38 = vadd.f32 %v246_v37, %v242_v36 }
 0x256   :  { %249 = vrot.lane.b32.xlu0 %v247_v38, %s2248_s6  ;;  %v349_v60 = vrot.slane %v247_v38, 6  ;;  %v997_v2 = vrot.slane %v247_v38, %v2409_v62 }
 0x258   :  { %v998_v11 = vcombine.high %v997_v2, %v997_v2  ;;  %v1005_v15 = vrot.slane %v997_v2, %v2409_v62 }
 0x25a   :  { %v1012_v20 = vrot.slane %v998_v11, %v2409_v62 }
 0x2c8   :  { %v250_v39 = vpop.permute.xlu0 %249 }
 0x2c9   :  { %1894 = vmatmul.mubr.msk.f32.vlgmr.msra.gmra.mrb[4].mxu0 %vm145_vm2, %v250_v39 }
 0x2ca   :  { %2041 = vmatpush3.bf16.msra.mxu0 %v2339_v7  ;;  %1915 = vmatprep.mubr.msk.f32.mxu0 %vm2245_vm1, %v2246_v8 }
 0x2cb   :  { %2042 = vmatprep.subr.bf16.mxu0 %v2244_v6 }
 0x2ce   :  { %2044 = vmatpush3.bf16.msra.mxu0 %v2356_v12 }
 0x2cf   :  { %2051 = vmatprep.subr.bf16.mxu0 %v2244_v6 }
 0x39c   :  { %v319_v40 = vpop.f32.mrb[4].mxu0 }
 0x39d   :  { %v320_v41 = vadd.f32 %v2384_v18, %v319_v40  ;;  %v1895_v42 = vpop.f32.mrb[5].mxu0 }
 0x39f   :  { %v324_v43 = vrot.slane %v320_v41, 6 }
 0x3a1   :  { %333 = vrot.lane.b32.xlu1 %v324_v43, %s2247_s21  ;;  %v326_v44 = vadd.f32 %v324_v43, %v2388_v22 }
 0x3a3   :  { %v1775_v45 = vmul.f32 -1.442695, %v326_v44 }
 0x3a5   :  { %2124 = vpow2.f32 %v1775_v45 }
 0x3af   :  { %v2125_v46 = vpop.eup %2124 }
 0x3b0   :  { %v330_v47 = vadd.f32 1.0, %v2125_v46 }
 0x3b2   :  { %2126 = vrcp.f32 %v330_v47 }
 0x3bc   :  { %v2127_v48 = vpop.eup %2126 }
 0x3bd   :  { %v343_v59 = vsub.f32 1.0, %v2127_v48  ;;  %v351_v0 = vmul.f32 %v2127_v48, %v349_v60 }
 0x413   :  { %v334_v49 = vpop.permute.xlu1 %333 }
 0x414   :  { %v336_v50 = vmul.f32 %v2127_v48, %v334_v49 }
 0x416   :  { %338 = vrot.lane.b32.xlu0 %v336_v50, %s2247_s21 }
 0x488   :  { %v339_v51 = vpop.permute.xlu0 %338 }
 0x489   :  { %v341_v52 = vadd.f32 %v339_v51, %v2388_v22 }
 0x48b   :  { %2128 = vtanh.f32 %v341_v52 }
 0x495   :  { %v2129_v53 = vpop.eup %2128 }
 0x496   :  { %345 = vrot.lane.b32.xlu1 %v2129_v53, %s2248_s6 }
 0x508   :  { %v346_v61 = vpop.permute.xlu1 %345 }
 0x509   :  { %v348_v63 = vmul.f32 %v346_v61, %v343_v59 }
 0x50b   :  { %v352_v1 = vadd.f32 %v351_v0, %v348_v63 }
 0x50d   :  { %v1021_v3 = vrot.slane %v352_v1, %v2409_v62  ;;  %v354_v4 = vrot.slane %v352_v1, 2  ;;  %v455_v41 = vrot.slane %v352_v1, 6 }
 0x50f   :  { %v1022_v9 = vcombine.high %v1021_v3, %v1021_v3  ;;  %v1029_v10 = vrot.slane %v1021_v3, %v2409_v62  ;;  %355 = vrot.lane.b32.xlu0 %v354_v4, %s2248_s6 }
 0x511   :  { %v1036_v13 = vrot.slane %v1022_v9, %v2409_v62  ;;  %v1037_v14 = vcombine.high %v1029_v10, %v1029_v10 }
 0x513   :  { %v1038_v17 = vcombine.high %v1036_v13, %v1036_v13  ;;  %v1184_v19 = vrot.slane %v1037_v14, %v2413_v5 }
 0x515   :  { %v1188_v21 = vrot.slane %v1038_v17, %v2413_v5  ;;  %v1252_v23 = vsel %vm1251_vm3, %v1005_v15, %v1184_v19 }
 0x517   :  { %v1253_v24 = vsel %vm1251_vm3, %v1012_v20, %v1188_v21 }
 0x581   :  { %v356_v25 = vpop.permute.xlu0 %355 }
 0x582   :  { %1905 = vmatmul.mubr.msk.f32.vlgmr.msra.gmra.mrb[0].mxu1 %vm145_vm2, %v356_v25 }
 0x583   :  { %2047 = vmatpush3.bf16.msra.mxu1 %v2339_v7  ;;  %1926 = vmatprep.mubr.msk.f32.mxu1 %vm2245_vm1, %v2246_v8 }
 0x584   :  { %2048 = vmatprep.subr.bf16.mxu1 %v2244_v6 }
 0x587   :  { %2050 = vmatpush3.bf16.msra.mxu1 %v2356_v12 }
 0x588   :  { %2057 = vmatprep.subr.bf16.mxu1 %v2244_v6 }
 0x655   :  { %v425_v26 = vpop.f32.mrb[0].mxu1 }
 0x656   :  { %v426_v27 = vadd.f32 %v2384_v18, %v425_v26  ;;  %v1906_v28 = vpop.f32.mrb[1].mxu1 }
 0x658   :  { %v430_v29 = vrot.slane %v426_v27, 4 }
 0x65a   :  { %439 = vrot.lane.b32.xlu1 %v430_v29, %s2247_s21  ;;  %v432_v30 = vadd.f32 %v430_v29, %v2388_v22 }
 0x65c   :  { %v1777_v31 = vmul.f32 -1.442695, %v432_v30 }
 0x65e   :  { %2130 = vpow2.f32 %v1777_v31 }
 0x668   :  { %v2131_v32 = vpop.eup %2130 }
 0x669   :  { %v436_v33 = vadd.f32 1.0, %v2131_v32 }
 0x66b   :  { %2132 = vrcp.f32 %v436_v33 }
 0x675   :  { %v2133_v34 = vpop.eup %2132 }
 0x676   :  { %v449_v40 = vsub.f32 1.0, %v2133_v34  ;;  %v457_v43 = vmul.f32 %v2133_v34, %v455_v41 }
 0x6cc   :  { %v440_v35 = vpop.permute.xlu1 %439 }
 0x6cd   :  { %v442_v36 = vmul.f32 %v2133_v34, %v440_v35 }
 0x6cf   :  { %444 = vrot.lane.b32.xlu0 %v442_v36, %s2247_s21 }
 0x741   :  { %v445_v37 = vpop.permute.xlu0 %444 }
 0x742   :  { %v447_v38 = vadd.f32 %v445_v37, %v2388_v22 }
 0x744   :  { %2134 = vtanh.f32 %v447_v38 }
 0x74e   :  { %v2135_v39 = vpop.eup %2134 }
 0x74f   :  { %451 = vrot.lane.b32.xlu1 %v2135_v39, %s2248_s6 }
 0x7c1   :  { %v452_v42 = vpop.permute.xlu1 %451 }
 0x7c2   :  { %v454_v44 = vmul.f32 %v452_v42, %v449_v40 }
 0x7c4   :  { %v458_v45 = vadd.f32 %v457_v43, %v454_v44 }
 0x7c6   :  { %v1039_v46 = vcombine.high %v458_v45, %v458_v45  ;;  %v460_v47 = vrot.slane %v458_v45, 4  ;;  %v561_v14 = vrot.slane %v458_v45, 6 }
 0x7c8   :  { %v1046_v48 = vrot.slane %v1039_v46, %v2409_v62  ;;  %461 = vrot.lane.b32.xlu0 %v460_v47, %s2248_s6 }
 0x7ca   :  { %v1047_v49 = vcombine.high %v1046_v48, %v1046_v48  ;;  %v1054_v50 = vrot.slane %v1046_v48, %v2409_v62 }
 0x7cc   :  { %v1061_v51 = vrot.slane %v1047_v49, %v2409_v62  ;;  %v1194_v52 = vrot.slane %v1054_v50, %v2413_v5 }
 0x7ce   :  { %v1198_v53 = vrot.slane %v1061_v51, %v2413_v5  ;;  %v1255_v54 = vsel %vm1254_vm4, %v1252_v23, %v1194_v52 }
 0x7d0   :  { %v1256_v55 = vsel %vm1254_vm4, %v1253_v24, %v1198_v53 }
 0x83a   :  { %v462_v56 = vpop.permute.xlu0 %461 }
 0x83b   :  { %1916 = vmatmul.mubr.msk.f32.vlgmr.msra.gmra.mrb[6].mxu0 %vm145_vm2, %v462_v56 }
 0x83c   :  { %2053 = vmatpush3.bf16.msra.mxu0 %v2339_v7  ;;  %1937 = vmatprep.mubr.msk.f32.mxu0 %vm2245_vm1, %v2246_v8 }
 0x83d   :  { %2054 = vmatprep.subr.bf16.mxu0 %v2244_v6 }
 0x840   :  { %2056 = vmatpush3.bf16.msra.mxu0 %v2356_v12 }
 0x841   :  { %2063 = vmatprep.subr.bf16.mxu0 %v2244_v6 }
 0x90e   :  { %v531_v57 = vpop.f32.mrb[6].mxu0 }
 0x90f   :  { %v532_v58 = vadd.f32 %v2384_v18, %v531_v57  ;;  %v1917_v59 = vpop.f32.mrb[7].mxu0 }
 0x911   :  { %v536_v60 = vrot.slane %v532_v58, 2 }
 0x913   :  { %545 = vrot.lane.b32.xlu1 %v536_v60, %s2247_s21  ;;  %v538_v61 = vadd.f32 %v536_v60, %v2388_v22 }
 0x915   :  { %v1779_v63 = vmul.f32 -1.442695, %v538_v61 }
 0x917   :  { %2136 = vpow2.f32 %v1779_v63 }
 0x921   :  { %v2137_v0 = vpop.eup %2136 }
 0x922   :  { %v542_v1 = vadd.f32 1.0, %v2137_v0 }
 0x924   :  { %2138 = vrcp.f32 %v542_v1 }
 0x92e   :  { %v2139_v2 = vpop.eup %2138 }
 0x92f   :  { %v555_v13 = vsub.f32 1.0, %v2139_v2  ;;  %v563_v17 = vmul.f32 %v2139_v2, %v561_v14 }
 0x985   :  { %v546_v3 = vpop.permute.xlu1 %545 }
 0x986   :  { %v548_v4 = vmul.f32 %v2139_v2, %v546_v3 }
 0x988   :  { %550 = vrot.lane.b32.xlu0 %v548_v4, %s2247_s21 }
 0x9fa   :  { %v551_v9 = vpop.permute.xlu0 %550 }
 0x9fb   :  { %v553_v10 = vadd.f32 %v551_v9, %v2388_v22 }
 0x9fd   :  { %2140 = vtanh.f32 %v553_v10 }
 0xa07   :  { %v2141_v11 = vpop.eup %2140 }
 0xa08   :  { %557 = vrot.lane.b32.xlu1 %v2141_v11, %s2248_s6 }
 0xa7a   :  { %v558_v15 = vpop.permute.xlu1 %557 }
 0xa7b   :  { %v560_v19 = vmul.f32 %v558_v15, %v555_v13 }
 0xa7d   :  { %v564_v20 = vadd.f32 %v563_v17, %v560_v19 }
 0xa7f   :  { %v1062_v21 = vcombine.high %v564_v20, %v564_v20  ;;  %v566_v23 = vrot.slane %v564_v20, 6 }
 0xa81   :  { %v1069_v24 = vrot.slane %v1062_v21, %v2409_v62  ;;  %567 = vrot.lane.b32.xlu0 %v566_v23, %s2248_s6 }
 0xa83   :  { %v1070_v25 = vcombine.high %v1069_v24, %v1069_v24  ;;  %v1077_v26 = vrot.slane %v1069_v24, %v2409_v62 }
 0xa85   :  { %v1084_v22 = vrot.slane %v1070_v25, %v2409_v62  ;;  %v1085_v27 = vcombine.high %v1077_v26, %v1077_v26 }
 0xa87   :  { %v1086_v28 = vcombine.high %v1084_v22, %v1084_v22  ;;  %v1204_v29 = vrot.slane %v1085_v27, %v2413_v5 }
 0xa89   :  { %v1208_v30 = vrot.slane %v1086_v28, %v2413_v5  ;;  %v1258_v31 = vsel %vm1257_vm5, %v1255_v54, %v1204_v29 }
 0xa8b   :  { %v1259_v32 = vsel %vm1257_vm5, %v1256_v55, %v1208_v30 }
 0xaf3   :  { %v568_v33 = vpop.permute.xlu0 %567 }
 0xaf4   :  { %1927 = vmatmul.mubr.msk.f32.vlgmr.msra.gmra.mrb[2].mxu1 %vm145_vm2, %v568_v33 }
 0xaf5   :  { %2059 = vmatpush3.bf16.msra.mxu1 %v2339_v7  ;;  %1948 = vmatprep.mubr.msk.f32.mxu1 %vm2245_vm1, %v2246_v8 }
 0xaf6   :  { %2060 = vmatprep.subr.bf16.mxu1 %v2244_v6 }
 0xaf9   :  { %2062 = vmatpush3.bf16.msra.mxu1 %v2356_v12 }
 0xafa   :  { %2069 = vmatprep.subr.bf16.mxu1 %v2244_v6 }
 0xbc7   :  { %v637_v34 = vpop.f32.mrb[2].mxu1 }
 0xbc8   :  { %v638_v35 = vadd.f32 %v2384_v18, %v637_v34  ;;  %v1928_v36 = vpop.f32.mrb[3].mxu1 }
 0xbca   :  { %649 = vrot.lane.b32.xlu1 %v638_v35, %s2247_s21  ;;  %v641_v37 = vadd.f32 %v638_v35, %v2379_v16 }
 0xbcc   :  { %v1781_v38 = vmul.f32 -1.442695, %v641_v37 }
 0xbce   :  { %2142 = vpow2.f32 %v1781_v38 }
 0xbd8   :  { %v2143_v39 = vpop.eup %2142 }
 0xbd9   :  { %v645_v40 = vadd.f32 1.0, %v2143_v39 }
 0xbdb   :  { %2144 = vrcp.f32 %v645_v40 }
 0xbe5   :  { %v2145_v41 = vpop.eup %2144 }
 0xbe6   :  { %v659_v47 = vsub.f32 1.0, %v2145_v41  ;;  %v666_v49 = vmul.f32 %v2145_v41, %v566_v23 }
 0xc3c   :  { %v650_v42 = vpop.permute.xlu1 %649 }
 0xc3d   :  { %v652_v43 = vmul.f32 %v2145_v41, %v650_v42 }
 0xc3f   :  { %654 = vrot.lane.b32.xlu0 %v652_v43, %s2247_s21 }
 0xcb1   :  { %v655_v44 = vpop.permute.xlu0 %654 }
 0xcb2   :  { %v657_v45 = vadd.f32 %v655_v44, %v2379_v16 }
 0xcb4   :  { %2146 = vtanh.f32 %v657_v45 }
 0xcbe   :  { %v2147_v46 = vpop.eup %2146 }
 0xcbf   :  { %661 = vrot.lane.b32.xlu1 %v2147_v46, %s2248_s6 }
 0xd31   :  { %v662_v48 = vpop.permute.xlu1 %661 }
 0xd32   :  { %v664_v50 = vmul.f32 %v662_v48, %v659_v47 }
 0xd34   :  { %v667_v51 = vadd.f32 %v666_v49, %v664_v50 }
 0xd36   :  { %v1093_v52 = vrot.slane %v667_v51, %v2409_v62  ;;  %669 = vrot.lane.b32.xlu0 %v667_v51, %s2248_s6  ;;  %v769_v17 = vrot.slane %v667_v51, 6 }
 0xd38   :  { %v1094_v53 = vcombine.high %v1093_v52, %v1093_v52  ;;  %v1101_v54 = vrot.slane %v1093_v52, %v2409_v62 }
 0xd3a   :  { %v1108_v55 = vrot.slane %v1094_v53, %v2409_v62  ;;  %v1214_v56 = vrot.slane %v1101_v54, %v2413_v5 }
 0xd3c   :  { %v1261_v57 = vsel %vm1260_vm6, %v1258_v31, %v1214_v56  ;;  %v1218_v58 = vrot.slane %v1108_v55, %v2413_v5 }
 0xd3e   :  { %v1262_v59 = vsel %vm1260_vm6, %v1259_v32, %v1218_v58 }
 0xda8   :  { %v670_v60 = vpop.permute.xlu0 %669 }
 0xda9   :  { %1938 = vmatmul.mubr.msk.f32.vlgmr.msra.gmra.mrb[8].mxu0 %vm145_vm2, %v670_v60 }
 0xdaa   :  { %2065 = vmatpush3.bf16.msra.mxu0 %v2339_v7  ;;  %1959 = vmatprep.mubr.msk.f32.mxu0 %vm2245_vm1, %v2246_v8 }
 0xdab   :  { %2066 = vmatprep.subr.bf16.mxu0 %v2244_v6 }
 0xdae   :  { %2068 = vmatpush3.bf16.msra.mxu0 %v2356_v12 }
 0xdaf   :  { %2075 = vmatprep.subr.bf16.mxu0 %v2244_v6 }
 0xe7c   :  { %v739_v61 = vpop.f32.mrb[8].mxu0 }
 0xe7d   :  { %v740_v63 = vadd.f32 %v2384_v18, %v739_v61  ;;  %v1939_v0 = vpop.f32.mrb[9].mxu0 }
 0xe7f   :  { %v744_v1 = vrot.slane %v740_v63, 6 }
 0xe81   :  { %753 = vrot.lane.b32.xlu1 %v744_v1, %s2247_s21  ;;  %v746_v2 = vadd.f32 %v744_v1, %v2379_v16 }
 0xe83   :  { %v1783_v3 = vmul.f32 -1.442695, %v746_v2 }
 0xe85   :  { %2148 = vpow2.f32 %v1783_v3 }
 0xe8f   :  { %v2149_v7 = vpop.eup %2148 }
 0xe90   :  { %v750_v4 = vadd.f32 1.0, %v2149_v7 }
 0xe92   :  { %2150 = vrcp.f32 %v750_v4 }
 0xe9c   :  { %v2151_v9 = vpop.eup %2150 }
 0xe9d   :  { %v763_v15 = vsub.f32 1.0, %v2151_v9  ;;  %v771_v21 = vmul.f32 %v2151_v9, %v769_v17 }
 0xef3   :  { %v754_v10 = vpop.permute.xlu1 %753 }
 0xef4   :  { %v756_v11 = vmul.f32 %v2151_v9, %v754_v10 }
 0xef6   :  { %758 = vrot.lane.b32.xlu0 %v756_v11, %s2247_s21 }
 0xf68   :  { %v759_v12 = vpop.permute.xlu0 %758 }
 0xf69   :  { %v761_v13 = vadd.f32 %v759_v12, %v2379_v16 }
 0xf6b   :  { %2152 = vtanh.f32 %v761_v13 }
 0xf75   :  { %v2153_v14 = vpop.eup %2152 }
 0xf76   :  { %765 = vrot.lane.b32.xlu1 %v2153_v14, %s2248_s6 }
 0xfe8   :  { %v766_v19 = vpop.permute.xlu1 %765 }
 0xfe9   :  { %v768_v20 = vmul.f32 %v766_v19, %v763_v15 }
 0xfeb   :  { %v772_v23 = vadd.f32 %v771_v21, %v768_v20  ;;  %v1276_v21 = vld [vmem:[%s2673_s3] sm:$0xff] }
 0xfed   :  { %v1115_v24 = vrot.slane %v772_v23, %v2409_v62  ;;  %v774_v25 = vrot.slane %v772_v23, 2  ;;  %v875_v50 = vrot.slane %v772_v23, 6  ;;  %v1277_v23 = vld [vmem:[%s2673_s3 + $0x8] sm:$0xff] }
 0xfef   :  { %v1116_v26 = vcombine.high %v1115_v24, %v1115_v24  ;;  %v1123_v22 = vrot.slane %v1115_v24, %v2409_v62  ;;  %775 = vrot.lane.b32.xlu0 %v774_v25, %s2248_s6  ;;  %v1280_v24 = vld [vmem:[%s2673_s3 + $0x20] sm:$0xff]  ;;  %v2070_v25 = vpack.c.bf16 %v1277_v23, %v1276_v21 }
 0xff0   :  { %v1627_v23 = vld [vmem:[%s2678_s8 + $0x20] sm:$0xff] }
 0xff1   :  { %v1130_v27 = vrot.slane %v1116_v26, %v2409_v62  ;;  %v1131_v28 = vcombine.high %v1123_v22, %v1123_v22  ;;  %v1278_v26 = vld [vmem:[%s2673_s3 + $0x10] sm:$0xff]  ;;  %v1279_v22 = vld [vmem:[%s2673_s3 + $0x18] sm:$0xff] }
 0xff3   :  { %v1132_v29 = vcombine.high %v1130_v27, %v1130_v27  ;;  %v1224_v30 = vrot.slane %v1131_v28, %v2413_v5  ;;  %v1282_v28 = vld [vmem:[%s2673_s3 + $0x30] sm:$0xff] }
 0xff5   :  { %v1264_v31 = vsel %vm1263_vm7, %v1261_v57, %v1224_v30  ;;  %v1228_v32 = vrot.slane %v1132_v29, %v2413_v5  ;;  %v1283_v29 = vld [vmem:[%s2673_s3 + $0x38] sm:$0xff]  ;;  %v2073_v30 = vpack.c.bf16 %v1279_v22, %v1278_v26 }
 0xff6   :  { %v1630_v26 = vld [vmem:[%s2678_s8 + $0x38] sm:$0xff] }
 0xff7   :  { %v1265_v33 = vsel %vm1263_vm7, %v1262_v59, %v1228_v32 }
0x1061   :  { %v776_v34 = vpop.permute.xlu0 %775 }
0x1062   :  { %1949 = vmatmul.mubr.msk.f32.vlgmr.msra.gmra.mrb[4].mxu1 %vm145_vm2, %v776_v34 }
0x1063   :  { %1970 = vmatprep.mubr.msk.f32.mxu1 %vm2245_vm1, %v2246_v8  ;;  %2071 = vmatpush3.bf16.msra.mxu1 %v2070_v25 }
0x1064   :  { %2072 = vmatprep.subr.bf16.mxu1 %v2244_v6 }
0x1067   :  { %2074 = vmatpush3.bf16.msra.mxu1 %v2073_v30 }
0x1068   :  { %2081 = vmatprep.subr.bf16.mxu1 %v2244_v6 }
0x1135   :  { %v845_v35 = vpop.f32.mrb[4].mxu1 }
0x1136   :  { %v846_v36 = vadd.f32 %v2384_v18, %v845_v35  ;;  %v1950_v37 = vpop.f32.mrb[5].mxu1 }
0x1138   :  { %v850_v38 = vrot.slane %v846_v36, 4 }
0x113a   :  { %859 = vrot.lane.b32.xlu1 %v850_v38, %s2247_s21  ;;  %v852_v39 = vadd.f32 %v850_v38, %v2379_v16 }
0x113c   :  { %v1785_v40 = vmul.f32 -1.442695, %v852_v39 }
0x113e   :  { %2154 = vpow2.f32 %v1785_v40 }
0x1148   :  { %v2155_v41 = vpop.eup %2154 }
0x1149   :  { %v856_v42 = vadd.f32 1.0, %v2155_v41 }
0x114b   :  { %2156 = vrcp.f32 %v856_v42 }
0x1155   :  { %v2157_v43 = vpop.eup %2156 }
0x1156   :  { %v869_v49 = vsub.f32 1.0, %v2157_v43  ;;  %v877_v52 = vmul.f32 %v2157_v43, %v875_v50 }
0x11ac   :  { %v860_v44 = vpop.permute.xlu1 %859 }
0x11ad   :  { %v862_v45 = vmul.f32 %v2157_v43, %v860_v44 }
0x11af   :  { %864 = vrot.lane.b32.xlu0 %v862_v45, %s2247_s21 }
0x1221   :  { %v865_v46 = vpop.permute.xlu0 %864 }
0x1222   :  { %v867_v47 = vadd.f32 %v865_v46, %v2379_v16 }
0x1224   :  { %2158 = vtanh.f32 %v867_v47 }
0x122e   :  { %v2159_v48 = vpop.eup %2158 }
0x122f   :  { %871 = vrot.lane.b32.xlu1 %v2159_v48, %s2248_s6 }
0x12a1   :  { %v872_v51 = vpop.permute.xlu1 %871 }
0x12a2   :  { %v874_v53 = vmul.f32 %v872_v51, %v869_v49 }
0x12a4   :  { %v878_v54 = vadd.f32 %v877_v52, %v874_v53 }
0x12a6   :  { %v1133_v55 = vcombine.high %v878_v54, %v878_v54  ;;  %v880_v56 = vrot.slane %v878_v54, 4 }
0x12a8   :  { %v1140_v57 = vrot.slane %v1133_v55, %v2409_v62  ;;  %881 = vrot.lane.b32.xlu0 %v880_v56, %s2248_s6 }
0x12aa   :  { %v1141_v58 = vcombine.high %v1140_v57, %v1140_v57  ;;  %v1148_v59 = vrot.slane %v1140_v57, %v2409_v62 }
0x12ac   :  { %v1234_v60 = vrot.slane %v1148_v59, %v2413_v5  ;;  %v1155_v61 = vrot.slane %v1141_v58, %v2409_v62 }
0x12ae   :  { %v1267_v63 = vsel %vm1266_vm8, %v1264_v31, %v1234_v60  ;;  %v1238_v0 = vrot.slane %v1155_v61, %v2413_v5  ;;  %v2079_v31 = vpack.c.bf16 %v1283_v29, %v1282_v28 }
0x12b0   :  { %v2515_v1 = vsel %vm1266_vm8, %v1265_v33, %v1238_v0  ;;  %v981_v33 = vrot.slane %v878_v54, 6  ;;  %v1272_v0 = vld [vmem:[%s2672_s2] sm:$0xff] }
0x131a   :  { %v882_v2 = vpop.permute.xlu0 %881 }
0x131b   :  { %1960 = vmatmul.mubr.msk.f32.vlgmr.msra.gmra.mrb[10].mxu0 %vm145_vm2, %v882_v2 }
0x131c   :  { %1981 = vmatprep.mubr.msk.f32.mxu0 %vm2245_vm1, %v2246_v8 }
0x13ee   :  { %v951_v3 = vpop.f32.mrb[10].mxu0 }
0x13ef   :  { %v952_v7 = vadd.f32 %v2384_v18, %v951_v3  ;;  %v1961_v4 = vpop.f32.mrb[11].mxu0  ;;  %v1274_v3 = vld [vmem:[%s2672_s2 + $0x10] sm:$0xff] }
0x13f1   :  { %v956_v9 = vrot.slane %v952_v7, 2  ;;  %v1275_v7 = vld [vmem:[%s2672_s2 + $0x18] sm:$0xf] }
0x13f2   :  { %v2086_v4 = vpack.c.bf16 %v1275_v7, %v1274_v3 }
0x13f3   :  { %965 = vrot.lane.b32.xlu1 %v956_v9, %s2247_s21  ;;  %v958_v10 = vadd.f32 %v956_v9, %v2379_v16 }
0x13f5   :  { %v1787_v11 = vmul.f32 -1.442695, %v958_v10 }
0x13f7   :  { %2160 = vpow2.f32 %v1787_v11 }
0x1401   :  { %v2161_v12 = vpop.eup %2160 }
0x1402   :  { %v962_v13 = vadd.f32 1.0, %v2161_v12 }
0x1404   :  { %2162 = vrcp.f32 %v962_v13 }
0x140e   :  { %v2163_v14 = vpop.eup %2162 }
0x140f   :  { %v975_v32 = vsub.f32 1.0, %v2163_v14  ;;  %v983_v35 = vmul.f32 %v2163_v14, %v981_v33 }
0x1465   :  { %v966_v15 = vpop.permute.xlu1 %965 }
0x1466   :  { %v968_v17 = vmul.f32 %v2163_v14, %v966_v15  ;;  %v1623_v15 = vld [vmem:[%s2678_s8] sm:$0xff] }
0x1468   :  { %970 = vrot.lane.b32.xlu0 %v968_v17, %s2247_s21  ;;  %v1624_v17 = vld [vmem:[%s2678_s8 + $0x8] sm:$0xff] }
0x14da   :  { %v971_v19 = vpop.permute.xlu0 %970 }
0x14db   :  { %v973_v20 = vadd.f32 %v971_v19, %v2379_v16  ;;  %v1281_v16 = vld [vmem:[%s2673_s3 + $0x28] sm:$0xff]  ;;  %v1625_v19 = vld [vmem:[%s2678_s8 + $0x10] sm:$0xff] }
0x14dc   :  { %v2076_v27 = vpack.c.bf16 %v1281_v16, %v1280_v24  ;;  %v1628_v24 = vld [vmem:[%s2678_s8 + $0x28] sm:$0xff]  ;;  %v1629_v16 = vld [vmem:[%s2678_s8 + $0x30] sm:$0xff] }
0x14dd   :  { %2164 = vtanh.f32 %v973_v20  ;;  %v2089_v20 = vpack.c.bf16 %v1624_v17, %v1623_v15  ;;  %v2097_v25 = vpack.c.bf16 %v1628_v24, %v1627_v23  ;;  %v2101_v22 = vpack.c.bf16 %v1630_v26, %v1629_v16 }
0x14de   :  { %2077 = vmatpush3.bf16.msra.mxu0 %v2076_v27 }
0x14df   :  { %2078 = vmatprep.subr.bf16.mxu0 %v2244_v6 }
0x14e2   :  { %2080 = vmatpush3.bf16.msra.mxu0 %v2079_v31 }
0x14e3   :  { %2085 = vmatprep.subr.bf16.mxu0 %v2244_v6 }
0x14e7   :  { %v2165_v18 = vpop.eup %2164 }
0x14e8   :  { %977 = vrot.lane.b32.xlu1 %v2165_v18, %s2248_s6  ;;  %v1626_v18 = vld [vmem:[%s2678_s8 + $0x18] sm:$0xff]  ;;  %s2252_s8 = smov [#allocation4]  }
0x14e9   :  { %v2093_v21 = vpack.c.bf16 %v1626_v18, %v1625_v19 }
0x155a   :  { %v978_v34 = vpop.permute.xlu1 %977 }
0x155b   :  { %v980_v36 = vmul.f32 %v978_v34, %v975_v32 }
0x155d   :  { %v2554_v37 = vadd.f32 %v983_v35, %v980_v36 }
0x155f   :  { %v1156_v38 = vcombine.high %v2554_v37, %v2554_v37 }
0x1561   :  { %v1163_v39 = vrot.slane %v1156_v38, %v2409_v62 }
0x1563   :  { %v1164_v40 = vcombine.high %v1163_v39, %v1163_v39  ;;  %v1171_v41 = vrot.slane %v1163_v39, %v2409_v62 }
0x1565   :  { %v1179_v42 = vcombine.high %v1171_v41, %v1171_v41  ;;  %v1178_v43 = vrot.slane %v1164_v40, %v2409_v62 }
0x1567   :  { %v1244_v6 = vrot.slane %v1179_v42, %v2413_v5  ;;  %v1180_v44 = vcombine.high %v1178_v43, %v1178_v43 }
0x1569   :  { %v1270_v45 = vsel %vm1269_vm9, %v1267_v63, %v1244_v6  ;;  %v1248_v46 = vrot.slane %v1180_v44, %v2413_v5 }
0x156a   :  { %1285 = vrot.lane.b32.xlu0 %v1270_v45, %s2248_s6 }
0x156b   :  { %v1271_v47 = vsel %vm1269_vm9, %v2515_v1, %v1248_v46  ;;  %v1273_v1 = vld [vmem:[%s2672_s2 + $0x8] sm:$0xf] }
0x156c   :  { %1360 = vrot.lane.b32.xlu1 %v1271_v47, %s2248_s6  ;;  %v2082_v2 = vpack.c.bf16 %v1273_v1, %v1272_v0 }
0x15dc   :  { %v2566_v48 = vpop.permute.xlu0 %1285 }
0x15dd   :  { %1971 = vmatmul.mubr.msk.f32.vlgmr.msra.gmra.mrb[6].mxu1 %vm145_vm2, %v2566_v48 }
0x15de   :  { %v2570_v49 = vpop.permute.xlu1 %1360  ;;  %1988 = vmatprep.mubr.msk.f32.mxu1 %vm2245_vm1, %v2246_v8  ;;  %2084 = vmatpush3.bf16.msk.msra.mxu1 %vm2083_vm12, %v2082_v2 }
0x15df   :  { %1982 = vmatmul.mubr.msk.f32.vlgmr.msra.gmra.mrb[12].mxu0 %vm145_vm2, %v2570_v49  ;;  %2090 = vmatprep.subr.bf16.mxu1 %v2089_v20 }
0x15e0   :  { %1995 = vmatprep.mubr.msk.f32.mxu0 %vm2245_vm1, %v2246_v8  ;;  %2088 = vmatpush3.bf16.msk.msra.mxu0 %vm2083_vm12, %v2086_v4 }
0x16b0   :  { %v1355_v62 = vpop.f32.mrb[6].mxu1 }
0x16b1   :  { %v1972_v5 = vpop.f32.mrb[7].mxu1  ;;  %v1435_v50 = vsel %vm1434_vm10, %v1355_v62, -inf }
0x16b2   :  { %v1430_v51 = vpop.f32.mrb[12].mxu0  ;;  %1436 = vmax.xlane.f32.xlu0 %v1435_v50 }
0x16b3   :  { %v1983_v52 = vpop.f32.mrb[13].mxu0  ;;  %v1438_v53 = vsel %vm1434_vm10, %v1430_v51, -inf }
0x16b4   :  { %1439 = vmax.xlane.f32.xlu1 %v1438_v53 }
0x173f   :  { %v1437_v54 = vpop.xlane.xlu0 %1436 }
0x1740   :  { %v1441_v55 = vsub.f32 %v1355_v62, %v1437_v54 }
0x1741   :  { %v1440_v56 = vpop.xlane.xlu1 %1439 }
0x1742   :  { %v1443_v57 = vmul.f32 1.442695, %v1441_v55  ;;  %v1442_v58 = vsub.f32 %v1430_v51, %v1440_v56 }
0x1744   :  { %2166 = vpow2.f32 %v1443_v57  ;;  %v1445_v59 = vmul.f32 1.442695, %v1442_v58 }
0x1746   :  { %2168 = vpow2.f32 %v1445_v59 }
0x174e   :  { %v2167_v8 = vpop.eup %2166 }
0x174f   :  { %v1447_v60 = vsel %vm1434_vm10, %v2167_v8, 0.0 }
0x1750   :  { %v2169_v61 = vpop.eup %2168  ;;  %1448 = vadd.xlane.f32.xlu0 %v1447_v60 }
0x1751   :  { %v1450_v63 = vsel %vm1434_vm10, %v2169_v61, 0.0 }
0x1754   :  { %1451 = vadd.xlane.f32.xlu0 %v1450_v63 }
0x17dd   :  { %v1449_v9 = vpop.xlane.xlu0 %1448 }
0x17de   :  { %2170 = vrcp.f32 %v1449_v9 }
0x17e1   :  { %v1452_v10 = vpop.xlane.xlu0 %1451 }
0x17e2   :  { %2172 = vrcp.f32 %v1452_v10 }
0x17e8   :  { %v2171_v11 = vpop.eup %2170 }
0x17e9   :  { %v1455_v12 = vmul.f32 %v2171_v11, %v2167_v8 }
0x17eb   :  { %1457 = vst.msk [vmem:[#allocation6] sm:$0xff] %vm1434_vm10, %v1455_v12  ;;  %1989 = vmatmul.mubr.msk.f32.vlgmr.msra.gmra.mrb[8].mxu1 %vm1434_vm10, %v1455_v12 }
0x17ec   :  { %v2173_v13 = vpop.eup %2172  ;;  %2092 = vmatpush3.bf16.msra.mxu1 %v2089_v20 }
0x17ed   :  { %v1456_v14 = vmul.f32 %v2173_v13, %v2169_v61  ;;  %2094 = vmatprep.subr.bf16.mxu1 %v2093_v21 }
0x17ef   :  { %1458 = vst.msk [vmem:[#allocation6 + $0x8] sm:$0xff] %vm1434_vm10, %v1456_v14  ;;  %1996 = vmatmul.mubr.msk.f32.vlgmr.msra.gmra.mrb[14].mxu0 %vm1434_vm10, %v1456_v14 }
0x17f0   :  { %2096 = vmatpush3.bf16.msra.mxu1 %v2093_v21 }
0x17f1   :  { %2098 = vmatprep.subr.bf16.mxu1 %v2097_v25 }
0x17f4   :  { %2100 = vmatpush3.bf16.msra.mxu1 %v2097_v25 }
0x17f5   :  { %2102 = vmatprep.subr.bf16.mxu1 %v2101_v22 }
0x17f8   :  { %2104 = vmatpush3.bf16.msra.mxu1 %v2101_v22 }
0x18be   :  { %v1531_v27 = vpop.f32.mrb[8].mxu1 }
0x18bf   :  { %1615 = vrot.lane.b32.xlu1 %v1531_v27, %s2249_s7  ;;  %v1990_v28 = vpop.f32.mrb[9].mxu1 }
0x18c2   :  { %v1607_v29 = vpop.f32.mrb[14].mxu0 }
0x18c3   :  { %1617 = vrot.lane.b32.xlu0 %v1607_v29, %s2249_s7  ;;  %v1997_v30 = vpop.f32.mrb[15].mxu0  ;;  %986 = vrot.lane.b32.xlu1 %v2554_v37, %s2248_s6  ;;  %s1741_s7 = sshll.u32 %s2252_s8, 4  ;;  %s1742_s7 = int_to_ptr.vmem [resolvable:$true] %s1741_s7 }
0x18c4   :  { %s2174_s3 = scalar_lea.vmem %s1742_s7, 32  ;;  %p2179_p1 = scmp.lt.s32.totalorder %s1742_s7, %s1742_s7 }
0x18c5   :  { %p2175_p0 = scmp.ne.s32.totalorder %s1742_s7, %s2174_s3  ;;  %p2180_p2 = scmp.lt.s32.totalorder %s2174_s3, %s2174_s3 }
0x18c7   :  { %p2181_p3 = por %p2180_p2, %p2179_p1 }
0x18c9   :  { %p2182_p4 = pnand %p2181_p3, %p2175_p0 }
0x1931   :  { %v1616_v31 = vpop.permute.xlu1 %1615 }
0x1932   :  { %v1621_v32 = vsel %vm145_vm2, %v2566_v48, %v1616_v31 }
0x1933   :  { %2014 = vmatprep.mubr.msk.f32.mxu1 %vm1638_vm13, %v1621_v32 }
0x1935   :  { %v1618_v33 = vpop.permute.xlu0 %1617  ;;  %v987_v34 = vpop.permute.xlu1 %986 }
0x1936   :  { %v1622_v35 = vsel %vm145_vm2, %v2570_v49, %v1618_v33  ;;  %990 = vst.msk [vmem:[#allocation4 - $0x6] sm:$0xc0] %vm989_vm14, %v987_v34 }
0x1937   :  { %2015 = vmatmul.mubr.msk.f32.vlgmr.msra.gmra.mrb[10].mxu1 %vm1638_vm13, %v1622_v35 }
0x1938   :  { %2185 = shalt.err (!%p2182_p4)
}
0x1939   :  { %s2186_s18 = scalar_lea.hbm %s2681_s11, 32 }
0x193a   :  { %p2187_p5 = scmp.ne.s32.totalorder %s2681_s11, %s2186_s18  ;;  %p2190_p6 = scmp.lt.u32.totalorder %s2186_s18, %s2681_s11 }
0x193c   :  { %p2192_p7 = pnand %p2190_p6, %p2187_p5 }
0x193e   :  { %2195 = shalt.err (!%p2192_p7)
}
0x193f   :  { %1744 = dma.vmem_to_hbm [thread:$0]  %s1742_s7, 32, %s2681_s11, [#allocation5]  }
0x1940   :  { %s2253_s2 = smov [#allocation6]  }
0x1941   :  { %s1750_s24 = sshll.u32 %s2253_s2, 4  ;;  %s1751_s24 = int_to_ptr.vmem [resolvable:$true] %s1750_s24 }
0x1942   :  { %s2196_s25 = scalar_lea.vmem %s1751_s24, 256  ;;  %p2201_p9 = scmp.lt.s32.totalorder %s1751_s24, %s1751_s24 }
0x1943   :  { %p2197_p8 = scmp.ne.s32.totalorder %s1751_s24, %s2196_s25  ;;  %p2202_p10 = scmp.lt.s32.totalorder %s2196_s25, %s2196_s25 }
0x1945   :  { %p2203_p11 = por %p2202_p10, %p2201_p9 }
0x1947   :  { %p2204_p12 = pnand %p2203_p11, %p2197_p8 }
0x1949   :  { %2207 = shalt.err (!%p2204_p12)
}
0x194a   :  { %s2208_s28 = scalar_lea.hbm %s2682_s12, 256 }
0x194b   :  { %p2209_p13 = scmp.ne.s32.totalorder %s2682_s12, %s2208_s28  ;;  %p2212_p0 = scmp.lt.u32.totalorder %s2208_s28, %s2682_s12 }
0x194d   :  { %p2214_p1 = pnand %p2212_p0, %p2209_p13 }
0x194f   :  { %2217 = shalt.err (!%p2214_p1)
}
0x1950   :  { %s2254_s13 = smov 128   ;;  %s2255_s14 = smov 8   ;;  %v1794_v36 = vld [vmem:[%s2679_s9] ss:$0 sm:$0xff]  ;;  %vm1720_vm15 = vcmask 195584  }
0x1951   :  { %1756 = dma.vmem_to_hbm [thread:$0]  %s1751_s24, 256, %s2682_s12, [#allocation5], %s2254_s13, %s2254_s13, %s2255_s14  }
0x1952   :  { %s2256_s8 = smov [#allocation2]  }
0x1953   :  { %s1728_s7 = sshll.u32 %s2256_s8, 4  ;;  %s1729_s7 = int_to_ptr.vmem [resolvable:$true] %s1728_s7 }
0x1954   :  { %s2218_s3 = scalar_lea.vmem %s1729_s7, 256  ;;  %p2223_p3 = scmp.lt.s32.totalorder %s1729_s7, %s1729_s7 }
0x1955   :  { %p2219_p2 = scmp.ne.s32.totalorder %s1729_s7, %s2218_s3  ;;  %p2224_p4 = scmp.lt.s32.totalorder %s2218_s3, %s2218_s3 }
0x1957   :  { %p2225_p5 = por %p2224_p4, %p2223_p3 }
0x1959   :  { %p2226_p6 = pnand %p2225_p5, %p2219_p2 }
0x1a0a   :  { %v2016_v37 = vpop.f32.mrb[10].mxu1 }
0x1a0b   :  { %v1717_v38 = vadd.f32 %v2016_v37, %v1794_v36  ;;  %v1711_v39 = vpop.f32.mrb[11].mxu1 }
0x1a0c   :  { %v1712_v40 = vadd.f32 %v1794_v36, %v1711_v39 }
0x1a0d   :  { %1722 = vst.msk [vmem:[#allocation2 + $0x8] sm:$0xff] %vm1720_vm15, %v1717_v38 }
0x1a0e   :  { %1721 = vst.msk [vmem:[#allocation2] sm:$0xff] %vm1720_vm15, %v1712_v40 }
0x1a0f   :  { %2229 = shalt.err (!%p2226_p6)
}
0x1a10   :  { %s2230_s9 = scalar_lea.hbm %s2680_s10, 256 }
0x1a11   :  { %p2231_p7 = scmp.ne.s32.totalorder %s2680_s10, %s2230_s9  ;;  %p2234_p8 = scmp.lt.u32.totalorder %s2230_s9, %s2680_s10 }
0x1a13   :  { %p2236_p9 = pnand %p2234_p8, %p2231_p7 }
0x1a15   :  { %2239 = shalt.err (!%p2236_p9)
}
0x1a16   :  { %1734 = dma.vmem_to_hbm [thread:$0]  %s1729_s7, 256, %s2680_s10, [#allocation3], %s2254_s13, %s2254_s13, %s2255_s14  }
0x1a17   :  { %2240 = dma.done.wait [#allocation3], 256  }
0x1a18   :  { %2241 = vsyncadd [#allocation3], 4294967040 }
0x1a19   :  { %2242 = dma.done.wait [#allocation5], 288  }
0x1a1a   :  { %2243 = vsyncadd [#allocation5], 4294967008 }
0x1a1b   :  { %1766 = vsyncpa [#allocation3], 1 }
0x1a1c   :  { %1767 = vsyncpa [#allocation5], 1 }

</bundles_post_ra>
